<compile_context>
chip_gen: v7x
topology: tpu7x:2x2x1
jax: 0.10.0
libtpu: 0.0.40
codegen_flags: <defaults>
</compile_context>

<pallas_src>
import numpy as np
import jax
import jax.numpy as jnp
from jax import lax
from jax.experimental import pallas as pl
from jax.experimental.pallas import tpu as pltpu

# ---------------- config (small, consistent with the module) ----------------
B = 2            # batch
C_IN = 4         # image channels
IMG = 16         # image H = W
PATCH = 4        # patch size
GRID_HW = IMG // PATCH
L = GRID_HW * GRID_HW        # 16 patch tokens
T = L + 1                    # 17 tokens (+CLS)
T_PAD = 24                   # per-batch padded token rows (multiple of 8 sublanes)
R = B * T_PAD                # 48 fused token rows
D = 32                       # hidden dim
NH = 4                       # attention heads
HD = D // NH                 # head dim = 8
MLP = 4 * D                  # 128
P = C_IN * PATCH * PATCH     # flattened patch dim = 64
EPS = 1e-6
SCALE = 1.0 / float(HD) ** 0.5

# bf16 weight-slab row offsets (slab width = 128 lanes)
_WP0, _WQKV0, _WO0, _W10, _W20, _HM0, _WROWS = 0, 64, 96, 128, 160, 288, 384
# f32 slab: rows [0:R) = token-bias template, rows [R:R+8) = LN params / biases
_BIAS0, _FROWS = R, R + 8


# --------------------------- shared math helpers -----------------------------
def _layernorm(v, g, b):
    mu = jnp.mean(v, axis=-1, keepdims=True)
    var = jnp.mean((v - mu) ** 2, axis=-1, keepdims=True)
    return (v - mu) * lax.rsqrt(var + EPS) * g + b


def _mm(a, b):
    """Reference-side matmul with bf16 operands, f32 accumulation (matches MXU numerics)."""
    return jnp.dot(a.astype(jnp.bfloat16), b.astype(jnp.bfloat16),
                   preferred_element_type=jnp.float32)


# ------------------------------ fused kernel --------------------------------
def fused_vit_kernel(patches_ref, wslab_ref, fslab_ref, out_ref):
    f32 = jnp.float32

    # ---- unpack the two constant slabs with static (8-aligned) ref slices ----
    wp    = wslab_ref[_WP0:_WQKV0, 0:D]          # (P, D)       bf16
    wqkv  = wslab_ref[_WQKV0:_WO0, 0:3 * D]      # (D, 3D)      bf16
    wo    = wslab_ref[_WO0:_W10, 0:D]            # (D, D)       bf16
    w1    = wslab_ref[_W10:_W20, 0:MLP]          # (D, MLP)     bf16
    w2    = wslab_ref[_W20:_HM0, 0:D]            # (MLP, D)     bf16
    hmask = wslab_ref[_HM0:_WROWS, 0:D]          # (NH*T_PAD,D) bf16 0/1, pad rows zero

    tokbias = fslab_ref[0:R, 0:D]                # (R, D) f32: bp+pos / cls+pos0 / 0
    bias_tile = fslab_ref[_BIAS0:_FROWS, :]      # (8, 128) f32, one load
    g1, bt1 = bias_tile[0:1, 0:D], bias_tile[1:2, 0:D]
    bqkv    = bias_tile[2:3, 0:3 * D]
    bo      = bias_tile[3:4, 0:D]
    g2, bt2 = bias_tile[4:5, 0:D], bias_tile[5:6, 0:D]
    b1      = bias_tile[6:7, 0:MLP]
    b2      = bias_tile[7:8, 0:D]

    def mxu(a_bf16, w_bf16):     # bf16 x bf16 -> f32 accumulation on the MXU
        return jnp.dot(a_bf16, w_bf16, preferred_element_type=f32)

    # ---- patch embed (+pos/CLS via tokbias); zero pad rows stay exactly zero ----
    tok = mxu(patches_ref[...], wp) + tokbias                       # (R, D) f32

    # ---- attention (pre-LN), one block-masked matmul group per batch element ----
    xn = _layernorm(tok, g1, bt1)
    qkv = mxu(xn.astype(jnp.bfloat16), wqkv) + bqkv                 # (R, 3D) f32
    q = qkv[:, 0:D].astype(jnp.bfloat16)
    k = qkv[:, D:2 * D].astype(jnp.bfloat16)
    v = qkv[:, 2 * D:3 * D].astype(jnp.bfloat16)

    attn_parts = []
    for b in range(B):                     # B=2, trace-time unroll; all slices 8-aligned
        r0 = b * T_PAD
        qb = q[r0:r0 + T_PAD]                                       # (T_PAD, D)
        kx = jnp.concatenate([k[r0:r0 + T_PAD]] * NH, axis=0) * hmask   # (NH*T_PAD, D)
        vx = jnp.concatenate([v[r0:r0 + T_PAD]] * NH, axis=0) * hmask   # (NH*T_PAD, D)
        # q @ K_exp^T with the transpose folded into the MXU contraction dims
        s = lax.dot_general(qb, kx, (((1,), (1,)), ((), ())),
                            preferred_element_type=f32) * SCALE     # (T_PAD, NH*T_PAD)
        e = jnp.exp(s - jnp.max(s, axis=-1, keepdims=True)).astype(jnp.bfloat16)
        unnorm = mxu(e, vx)      # each head's numerator lands in its own output columns
        denom = mxu(e, hmask)    # per-head softmax denominators, broadcast in place
        attn_parts.append(unnorm *
                          pl.reciprocal(jnp.maximum(denom, 1e-30), approx=True))
    attn = jnp.concatenate(attn_parts, axis=0)                      # (R, D) f32

    x1 = tok + mxu(attn.astype(jnp.bfloat16), wo) + bo

    # ---- MLP (pre-LN) ----
    xn2 = _layernorm(x1, g2, bt2)
    h = jax.nn.gelu(mxu(xn2.astype(jnp.bfloat16), w1) + b1, approximate=True)
    x2 = x1 + mxu(h.astype(jnp.bfloat16), w2) + b2                  # (R, D)

    # ---- ViTFeature2D: drop CLS + pad rows -> (B, L, D), aligned row slices ----
    for b in range(B):
        out_ref[b] = x2[b * T_PAD:b * T_PAD + L, :]


# ------------------------- host-side packing (once) --------------------------
def _make_hmask_np():
    rows = np.arange(NH * T_PAD)
    head = rows // T_PAD
    tpos = rows % T_PAD
    col_head = np.arange(D) // HD
    m = (head[:, None] == col_head[None, :]) & (tpos[:, None] < T)   # pad keys masked out
    return m.astype(np.float32)


def _pad_cols(m, width=128):
    r, c = m.shape
    return jnp.pad(m, ((0, 0), (0, width - c)))


def pack_params(params):
    """Pack all constants into 2 slabs (bf16 weights+hmask, f32 biases): 18 operands -> 2."""
    wp, bp, cls_tok, pos = params["embed"]
    (g1, bt1, wqkv, bqkv, wo, bo, g2, bt2, w1, b1, w2, b2) = params["block"]

    hmask = jnp.asarray(_make_hmask_np())
    wslab = jnp.concatenate(
        [_pad_cols(wp), _pad_cols(wqkv), _pad_cols(wo),
         _pad_cols(w1), _pad_cols(w2), _pad_cols(hmask)],
        axis=0).astype(jnp.bfloat16)                                 # (384, 128)

    # Token-bias template: patch row t -> bp + pos[1+t]; CLS row (stored last in the
    # padded block) -> cls + pos[0]; pad rows -> exactly zero.  Same for every batch.
    tokbias1 = jnp.concatenate(
        [bp + pos[1:1 + L], cls_tok + pos[0:1],
         jnp.zeros((T_PAD - T, D), jnp.float32)], axis=0)            # (T_PAD, D)
    tokbias = jnp.tile(tokbias1, (B, 1))                             # (R, D)
    bias_rows = jnp.concatenate(
        [_pad_cols(g1), _pad_cols(bt1), _pad_cols(bqkv), _pad_cols(bo),
         _pad_cols(g2), _pad_cols(bt2), _pad_cols(b1), _pad_cols(b2)], axis=0)
    fslab = jnp.concatenate([_pad_cols(tokbias), bias_rows], axis=0)  # (56, 128) f32

    assert wslab.shape == (_WROWS, 128) and fslab.shape == (_FROWS, 128)
    return {"wslab": wslab, "fslab": fslab}


# ------------------------------ host wrappers -------------------------------
def extract_patches(x):
    """NCHW image -> (B, L, C*ps*ps) flattened non-overlapping patches."""
    xr = x.reshape(B, C_IN, GRID_HW, PATCH, GRID_HW, PATCH)
    xr = xr.transpose(0, 2, 4, 1, 3, 5)          # (B, gh, gw, C, ph, pw)
    return xr.reshape(B, L, P)


def fused_forward(patches_padded, wslab, fslab):
    return pl.pallas_call(
        fused_vit_kernel,
        out_shape=jax.ShapeDtypeStruct((B, L, D), jnp.float32),
        grid=(1,),
        in_specs=[pl.BlockSpec((R, P), lambda i: (0, 0)),
                  pl.BlockSpec((_WROWS, 128), lambda i: (0, 0)),
                  pl.BlockSpec((_FROWS, 128), lambda i: (0, 0))],
        out_specs=pl.BlockSpec((B, L, D), lambda i: (0, 0, 0)),
        compiler_params=pltpu.CompilerParams(
            dimension_semantics=("arbitrary",),
            allow_input_fusion=[True, False, False]),
        cost_estimate=pl.CostEstimate(flops=2_300_000, transcendentals=13_000,
                                      bytes_accessed=150_000),
    )(patches_padded, wslab, fslab)


@jax.jit
def vit_feature2d(x, wslab, fslab):
    """Pallas equivalent of ViTFeature2D(seq_extractor, patch_size).forward."""
    patches = extract_patches(x)                                     # (B, L, P) XLA glue
    patches = jnp.pad(patches, ((0, 0), (0, T_PAD - L), (0, 0)))     # zero pad/CLS rows
    patches = patches.reshape(R, P).astype(jnp.bfloat16)             # (R, P) bf16
    seq = fused_forward(patches, wslab, fslab)                       # (B, L, D), CLS dropped
    # ViTFeature2D: permute(0, 2, 1).reshape(B, C, H, W) — cheap XLA transpose
    feat2d = seq.transpose(0, 2, 1).reshape(B, D, GRID_HW, GRID_HW)
    return {"feat": feat2d}


def init_params(key):
    ks = jax.random.split(key, 8)
    s = 0.02
    w_patch = s * jax.random.normal(ks[0], (P, D), jnp.float32)
    b_patch = jnp.zeros((1, D), jnp.float32)
    cls_tok = s * jax.random.normal(ks[1], (1, D), jnp.float32)
    pos_emb = s * jax.random.normal(ks[2], (T, D), jnp.float32)
    g1 = jnp.ones((1, D), jnp.float32)
    bt1 = jnp.zeros((1, D), jnp.float32)
    wqkv = s * jax.random.normal(ks[3], (D, 3 * D), jnp.float32)
    bqkv = jnp.zeros((1, 3 * D), jnp.float32)
    wo = s * jax.random.normal(ks[4], (D, D), jnp.float32)
    bo = jnp.zeros((1, D), jnp.float32)
    g2 = jnp.ones((1, D), jnp.float32)
    bt2 = jnp.zeros((1, D), jnp.float32)
    w1 = s * jax.random.normal(ks[5], (D, MLP), jnp.float32)
    b1 = jnp.zeros((1, MLP), jnp.float32)
    w2 = s * jax.random.normal(ks[6], (MLP, D), jnp.float32)
    b2 = jnp.zeros((1, D), jnp.float32)
    return {
        "embed": (w_patch, b_patch, cls_tok, pos_emb),
        "block": (g1, bt1, wqkv, bqkv, wo, bo, g2, bt2, w1, b1, w2, b2),
    }


# --------------------------- pure-JAX reference -----------------------------
def _reference(x, params):
    wp, bp, cls_tok, pos = params["embed"]
    (g1, bt1, wqkv, bqkv, wo, bo, g2, bt2, w1, b1, w2, b2) = params["block"]
    patches = extract_patches(x)
    emb = _mm(patches, wp) + bp                            # (B, L, D)
    cls = jnp.broadcast_to(cls_tok[None], (B, 1, D))
    tok = jnp.concatenate([cls, emb], axis=1) + pos[None]  # CLS-first ordering

    xn = _layernorm(tok, g1, bt1)
    qkv = _mm(xn, wqkv) + bqkv
    q, k, v = qkv[..., :D], qkv[..., D:2 * D], qkv[..., 2 * D:]
    q = q.reshape(B, T, NH, HD).transpose(0, 2, 1, 3)
    k = k.reshape(B, T, NH, HD).transpose(0, 2, 1, 3)
    v = v.reshape(B, T, NH, HD).transpose(0, 2, 1, 3)
    s = jnp.einsum("bhtd,bhsd->bhts", q, k) * SCALE
    p = jax.nn.softmax(s, axis=-1)                         # exact f32 softmax
    o = jnp.einsum("bhts,bhsd->bhtd", p, v).transpose(0, 2, 1, 3).reshape(B, T, D)
    x1 = tok + _mm(o, wo) + bo
    xn2 = _layernorm(x1, g2, bt2)
    h = jax.nn.gelu(_mm(xn2, w1) + b1, approximate=True)
    seq = x1 + _mm(h, w2) + b2
    seq = seq[:, 1:, :]                                    # drop [CLS]
    return seq.transpose(0, 2, 1).reshape(B, D, GRID_HW, GRID_HW)


# ---------------------------------- main -------------------------------------
if __name__ == "__main__":
    key = jax.random.PRNGKey(0)
    kx, kp = jax.random.split(key)
    x = jax.random.normal(kx, (B, C_IN, IMG, IMG), jnp.float32)
    params = init_params(kp)
    packed = pack_params(params)          # one-time host-side packing / bf16 pre-cast

    maps = vit_feature2d(x, packed["wslab"], packed["fslab"])
    feat = jax.block_until_ready(maps["feat"])

    assert feat.shape == (B, D, GRID_HW, GRID_HW), feat.shape
    ref = _reference(x, params)
    err = float(jnp.max(jnp.abs(feat - ref)))
    assert jnp.allclose(feat, ref, rtol=2e-3, atol=2e-3), f"mismatch vs reference: {err}"
    print("KERNEL_OK")
</pallas_src>

<mosaic_0001>
module attributes {stable_mosaic.version = 11 : i64} {
  func.func @fused_vit_kernel(%arg0: i32, %arg1: memref<48x64xbf16, #tpu.memory_space<vmem>>, %arg2: memref<384x128xbf16, #tpu.memory_space<vmem>>, %arg3: memref<56x128xf32, #tpu.memory_space<vmem>>, %arg4: memref<2x16x32xf32, #tpu.memory_space<vmem>>) attributes {dimension_semantics = [#tpu.dimension_semantics<arbitrary>], iteration_bounds = array<i64: 1>, scalar_prefetch = 0 : i64, scratch_operands = 0 : i64, tpu.core_type = #tpu.core_type<tc>, window_params = [{pipeline_mode = #tpu.pipeline_mode<synchronous>, transform_indices = @transform_0, window_bounds = array<i64: 48, 64>}, {pipeline_mode = #tpu.pipeline_mode<synchronous>, transform_indices = @transform_1, window_bounds = array<i64: 384, 128>}, {pipeline_mode = #tpu.pipeline_mode<synchronous>, transform_indices = @transform_2, window_bounds = array<i64: 56, 128>}, {pipeline_mode = #tpu.pipeline_mode<synchronous>, transform_indices = @transform_3, window_bounds = array<i64: 2, 16, 32>}]} {
    %c0 = arith.constant 0 : index
    %c0_0 = arith.constant 0 : index
    %0 = vector.load %arg2[%c0, %c0_0] : memref<384x128xbf16, #tpu.memory_space<vmem>>, vector<64x32xbf16>
    %c64 = arith.constant 64 : index
    %c0_1 = arith.constant 0 : index
    %1 = vector.load %arg2[%c64, %c0_1] : memref<384x128xbf16, #tpu.memory_space<vmem>>, vector<32x96xbf16>
    %c96 = arith.constant 96 : index
    %c0_2 = arith.constant 0 : index
    %2 = vector.load %arg2[%c96, %c0_2] : memref<384x128xbf16, #tpu.memory_space<vmem>>, vector<32x32xbf16>
    %c128 = arith.constant 128 : index
    %c0_3 = arith.constant 0 : index
    %3 = vector.load %arg2[%c128, %c0_3] : memref<384x128xbf16, #tpu.memory_space<vmem>>, vector<32x128xbf16>
    %c160 = arith.constant 160 : index
    %c0_4 = arith.constant 0 : index
    %4 = vector.load %arg2[%c160, %c0_4] : memref<384x128xbf16, #tpu.memory_space<vmem>>, vector<128x32xbf16>
    %c288 = arith.constant 288 : index
    %c0_5 = arith.constant 0 : index
    %5 = vector.load %arg2[%c288, %c0_5] : memref<384x128xbf16, #tpu.memory_space<vmem>>, vector<96x32xbf16>
    %c0_6 = arith.constant 0 : index
    %c0_7 = arith.constant 0 : index
    %6 = vector.load %arg3[%c0_6, %c0_7] : memref<56x128xf32, #tpu.memory_space<vmem>>, vector<48x32xf32>
    %c48 = arith.constant 48 : index
    %c0_8 = arith.constant 0 : index
    %7 = vector.load %arg3[%c48, %c0_8] : memref<56x128xf32, #tpu.memory_space<vmem>>, vector<8x128xf32>
    %8 = vector.extract_strided_slice %7 {offsets = [0, 0], sizes = [1, 32], strides = [1, 1]} : vector<8x128xf32> to vector<1x32xf32>
    %9 = vector.extract_strided_slice %7 {offsets = [1, 0], sizes = [1, 32], strides = [1, 1]} : vector<8x128xf32> to vector<1x32xf32>
    %10 = vector.extract_strided_slice %7 {offsets = [2, 0], sizes = [1, 96], strides = [1, 1]} : vector<8x128xf32> to vector<1x96xf32>
    %11 = vector.extract_strided_slice %7 {offsets = [3, 0], sizes = [1, 32], strides = [1, 1]} : vector<8x128xf32> to vector<1x32xf32>
    %12 = vector.extract_strided_slice %7 {offsets = [4, 0], sizes = [1, 32], strides = [1, 1]} : vector<8x128xf32> to vector<1x32xf32>
    %13 = vector.extract_strided_slice %7 {offsets = [5, 0], sizes = [1, 32], strides = [1, 1]} : vector<8x128xf32> to vector<1x32xf32>
    %14 = vector.extract_strided_slice %7 {offsets = [6, 0], sizes = [1, 128], strides = [1, 1]} : vector<8x128xf32> to vector<1x128xf32>
    %15 = vector.extract_strided_slice %7 {offsets = [7, 0], sizes = [1, 32], strides = [1, 1]} : vector<8x128xf32> to vector<1x32xf32>
    %c0_9 = arith.constant 0 : index
    %c0_10 = arith.constant 0 : index
    %16 = vector.load %arg1[%c0_9, %c0_10] : memref<48x64xbf16, #tpu.memory_space<vmem>>, vector<48x64xbf16>
    %cst = arith.constant dense<0.000000e+00> : vector<48x32xf32>
    %17 = tpu.matmul %16, %0, %cst {dimension_numbers = #tpu.dot_dimension_numbers<[1], [0], [0], [1], [0, 0, 1, 1], [], []>} : vector<48x64xbf16>, vector<64x32xbf16>, vector<48x32xf32> -> vector<48x32xf32>
    %18 = arith.addf %17, %6 : vector<48x32xf32>
    %cst_11 = arith.constant dense<0.000000e+00> : vector<48xf32>
    %19 = vector.multi_reduction <add>, %18, %cst_11 [1] : vector<48x32xf32> to vector<48xf32>
    %20 = vector.shape_cast %19 : vector<48xf32> to vector<48x1xf32>
    %cst_12 = arith.constant 3.200000e+01 : f32
    %21 = vector.broadcast %cst_12 : f32 to vector<48x1xf32>
    %22 = arith.divf %20, %21 : vector<48x1xf32>
    %23 = vector.broadcast %22 : vector<48x1xf32> to vector<48x32xf32>
    %24 = arith.subf %18, %23 : vector<48x32xf32>
    %25 = arith.mulf %24, %24 : vector<48x32xf32>
    %cst_13 = arith.constant dense<0.000000e+00> : vector<48xf32>
    %26 = vector.multi_reduction <add>, %25, %cst_13 [1] : vector<48x32xf32> to vector<48xf32>
    %27 = vector.shape_cast %26 : vector<48xf32> to vector<48x1xf32>
    %cst_14 = arith.constant 3.200000e+01 : f32
    %28 = vector.broadcast %cst_14 : f32 to vector<48x1xf32>
    %29 = arith.divf %27, %28 : vector<48x1xf32>
    %30 = vector.broadcast %22 : vector<48x1xf32> to vector<48x32xf32>
    %31 = arith.subf %18, %30 : vector<48x32xf32>
    %cst_15 = arith.constant 9.99999997E-7 : f32
    %32 = vector.broadcast %cst_15 : f32 to vector<48x1xf32>
    %33 = arith.addf %29, %32 : vector<48x1xf32>
    %34 = math.rsqrt %33 : vector<48x1xf32>
    %35 = vector.broadcast %34 : vector<48x1xf32> to vector<48x32xf32>
    %36 = arith.mulf %31, %35 : vector<48x32xf32>
    %37 = vector.broadcast %8 : vector<1x32xf32> to vector<48x32xf32>
    %38 = arith.mulf %36, %37 : vector<48x32xf32>
    %39 = vector.broadcast %9 : vector<1x32xf32> to vector<48x32xf32>
    %40 = arith.addf %38, %39 : vector<48x32xf32>
    %41 = arith.truncf %40 : vector<48x32xf32> to vector<48x32xbf16>
    %cst_16 = arith.constant dense<0.000000e+00> : vector<48x96xf32>
    %42 = tpu.matmul %41, %1, %cst_16 {dimension_numbers = #tpu.dot_dimension_numbers<[1], [0], [0], [1], [0, 0, 1, 1], [], []>} : vector<48x32xbf16>, vector<32x96xbf16>, vector<48x96xf32> -> vector<48x96xf32>
    %43 = vector.broadcast %10 : vector<1x96xf32> to vector<48x96xf32>
    %44 = arith.addf %42, %43 : vector<48x96xf32>
    %45 = vector.extract_strided_slice %44 {offsets = [0, 0], sizes = [48, 32], strides = [1, 1]} : vector<48x96xf32> to vector<48x32xf32>
    %46 = arith.truncf %45 : vector<48x32xf32> to vector<48x32xbf16>
    %47 = vector.extract_strided_slice %44 {offsets = [0, 32], sizes = [48, 32], strides = [1, 1]} : vector<48x96xf32> to vector<48x32xf32>
    %48 = arith.truncf %47 : vector<48x32xf32> to vector<48x32xbf16>
    %49 = vector.extract_strided_slice %44 {offsets = [0, 64], sizes = [48, 32], strides = [1, 1]} : vector<48x96xf32> to vector<48x32xf32>
    %50 = arith.truncf %49 : vector<48x32xf32> to vector<48x32xbf16>
    %51 = vector.extract_strided_slice %46 {offsets = [0, 0], sizes = [24, 32], strides = [1, 1]} : vector<48x32xbf16> to vector<24x32xbf16>
    %52 = vector.extract_strided_slice %48 {offsets = [0, 0], sizes = [24, 32], strides = [1, 1]} : vector<48x32xbf16> to vector<24x32xbf16>
    %53 = tpu.concatenate %52, %52, %52, %52 in 0 : vector<24x32xbf16>, vector<24x32xbf16>, vector<24x32xbf16>, vector<24x32xbf16> -> vector<96x32xbf16>
    %54 = arith.mulf %53, %5 : vector<96x32xbf16>
    %55 = vector.extract_strided_slice %50 {offsets = [0, 0], sizes = [24, 32], strides = [1, 1]} : vector<48x32xbf16> to vector<24x32xbf16>
    %56 = tpu.concatenate %55, %55, %55, %55 in 0 : vector<24x32xbf16>, vector<24x32xbf16>, vector<24x32xbf16>, vector<24x32xbf16> -> vector<96x32xbf16>
    %57 = arith.mulf %56, %5 : vector<96x32xbf16>
    %cst_17 = arith.constant dense<0.000000e+00> : vector<24x96xf32>
    %58 = tpu.matmul %51, %54, %cst_17 {dimension_numbers = #tpu.dot_dimension_numbers<[1], [1], [0], [0], [0, 0, 1, 0], [], []>} : vector<24x32xbf16>, vector<96x32xbf16>, vector<24x96xf32> -> vector<24x96xf32>
    %cst_18 = arith.constant 0.353553385 : f32
    %59 = vector.broadcast %cst_18 : f32 to vector<24x96xf32>
    %60 = arith.mulf %58, %59 : vector<24x96xf32>
    %cst_19 = arith.constant dense<0xFF800000> : vector<24xf32>
    %61 = vector.multi_reduction <maximumf>, %60, %cst_19 [1] : vector<24x96xf32> to vector<24xf32>
    %62 = vector.shape_cast %61 : vector<24xf32> to vector<24x1xf32>
    %63 = vector.broadcast %62 : vector<24x1xf32> to vector<24x96xf32>
    %64 = arith.subf %60, %63 : vector<24x96xf32>
    %65 = math.exp %64 : vector<24x96xf32>
    %66 = arith.truncf %65 : vector<24x96xf32> to vector<24x96xbf16>
    %cst_20 = arith.constant dense<0.000000e+00> : vector<24x32xf32>
    %67 = tpu.matmul %66, %57, %cst_20 {dimension_numbers = #tpu.dot_dimension_numbers<[1], [0], [0], [1], [0, 0, 1, 1], [], []>} : vector<24x96xbf16>, vector<96x32xbf16>, vector<24x32xf32> -> vector<24x32xf32>
    %cst_21 = arith.constant dense<0.000000e+00> : vector<24x32xf32>
    %68 = tpu.matmul %66, %5, %cst_21 {dimension_numbers = #tpu.dot_dimension_numbers<[1], [0], [0], [1], [0, 0, 1, 1], [], []>} : vector<24x96xbf16>, vector<96x32xbf16>, vector<24x32xf32> -> vector<24x32xf32>
    %cst_22 = arith.constant 1.000000e-30 : f32
    %69 = vector.broadcast %cst_22 : f32 to vector<24x32xf32>
    %70 = arith.maximumf %68, %69 : vector<24x32xf32>
    %71 = tpu.reciprocal %70 {approx = true} : vector<24x32xf32> -> vector<24x32xf32>
    %72 = arith.mulf %67, %71 : vector<24x32xf32>
    %73 = vector.extract_strided_slice %46 {offsets = [24, 0], sizes = [24, 32], strides = [1, 1]} : vector<48x32xbf16> to vector<24x32xbf16>
    %74 = vector.extract_strided_slice %48 {offsets = [24, 0], sizes = [24, 32], strides = [1, 1]} : vector<48x32xbf16> to vector<24x32xbf16>
    %75 = tpu.concatenate %74, %74, %74, %74 in 0 : vector<24x32xbf16>, vector<24x32xbf16>, vector<24x32xbf16>, vector<24x32xbf16> -> vector<96x32xbf16>
    %76 = arith.mulf %75, %5 : vector<96x32xbf16>
    %77 = vector.extract_strided_slice %50 {offsets = [24, 0], sizes = [24, 32], strides = [1, 1]} : vector<48x32xbf16> to vector<24x32xbf16>
    %78 = tpu.concatenate %77, %77, %77, %77 in 0 : vector<24x32xbf16>, vector<24x32xbf16>, vector<24x32xbf16>, vector<24x32xbf16> -> vector<96x32xbf16>
    %79 = arith.mulf %78, %5 : vector<96x32xbf16>
    %cst_23 = arith.constant dense<0.000000e+00> : vector<24x96xf32>
    %80 = tpu.matmul %73, %76, %cst_23 {dimension_numbers = #tpu.dot_dimension_numbers<[1], [1], [0], [0], [0, 0, 1, 0], [], []>} : vector<24x32xbf16>, vector<96x32xbf16>, vector<24x96xf32> -> vector<24x96xf32>
    %cst_24 = arith.constant 0.353553385 : f32
    %81 = vector.broadcast %cst_24 : f32 to vector<24x96xf32>
    %82 = arith.mulf %80, %81 : vector<24x96xf32>
    %cst_25 = arith.constant dense<0xFF800000> : vector<24xf32>
    %83 = vector.multi_reduction <maximumf>, %82, %cst_25 [1] : vector<24x96xf32> to vector<24xf32>
    %84 = vector.shape_cast %83 : vector<24xf32> to vector<24x1xf32>
    %85 = vector.broadcast %84 : vector<24x1xf32> to vector<24x96xf32>
    %86 = arith.subf %82, %85 : vector<24x96xf32>
    %87 = math.exp %86 : vector<24x96xf32>
    %88 = arith.truncf %87 : vector<24x96xf32> to vector<24x96xbf16>
    %cst_26 = arith.constant dense<0.000000e+00> : vector<24x32xf32>
    %89 = tpu.matmul %88, %79, %cst_26 {dimension_numbers = #tpu.dot_dimension_numbers<[1], [0], [0], [1], [0, 0, 1, 1], [], []>} : vector<24x96xbf16>, vector<96x32xbf16>, vector<24x32xf32> -> vector<24x32xf32>
    %cst_27 = arith.constant dense<0.000000e+00> : vector<24x32xf32>
    %90 = tpu.matmul %88, %5, %cst_27 {dimension_numbers = #tpu.dot_dimension_numbers<[1], [0], [0], [1], [0, 0, 1, 1], [], []>} : vector<24x96xbf16>, vector<96x32xbf16>, vector<24x32xf32> -> vector<24x32xf32>
    %cst_28 = arith.constant 1.000000e-30 : f32
    %91 = vector.broadcast %cst_28 : f32 to vector<24x32xf32>
    %92 = arith.maximumf %90, %91 : vector<24x32xf32>
    %93 = tpu.reciprocal %92 {approx = true} : vector<24x32xf32> -> vector<24x32xf32>
    %94 = arith.mulf %89, %93 : vector<24x32xf32>
    %95 = tpu.concatenate %72, %94 in 0 : vector<24x32xf32>, vector<24x32xf32> -> vector<48x32xf32>
    %96 = arith.truncf %95 : vector<48x32xf32> to vector<48x32xbf16>
    %cst_29 = arith.constant dense<0.000000e+00> : vector<48x32xf32>
    %97 = tpu.matmul %96, %2, %cst_29 {dimension_numbers = #tpu.dot_dimension_numbers<[1], [0], [0], [1], [0, 0, 1, 1], [], []>} : vector<48x32xbf16>, vector<32x32xbf16>, vector<48x32xf32> -> vector<48x32xf32>
    %98 = arith.addf %18, %97 : vector<48x32xf32>
    %99 = vector.broadcast %11 : vector<1x32xf32> to vector<48x32xf32>
    %100 = arith.addf %98, %99 : vector<48x32xf32>
    %cst_30 = arith.constant dense<0.000000e+00> : vector<48xf32>
    %101 = vector.multi_reduction <add>, %100, %cst_30 [1] : vector<48x32xf32> to vector<48xf32>
    %102 = vector.shape_cast %101 : vector<48xf32> to vector<48x1xf32>
    %cst_31 = arith.constant 3.200000e+01 : f32
    %103 = vector.broadcast %cst_31 : f32 to vector<48x1xf32>
    %104 = arith.divf %102, %103 : vector<48x1xf32>
    %105 = vector.broadcast %104 : vector<48x1xf32> to vector<48x32xf32>
    %106 = arith.subf %100, %105 : vector<48x32xf32>
    %107 = arith.mulf %106, %106 : vector<48x32xf32>
    %cst_32 = arith.constant dense<0.000000e+00> : vector<48xf32>
    %108 = vector.multi_reduction <add>, %107, %cst_32 [1] : vector<48x32xf32> to vector<48xf32>
    %109 = vector.shape_cast %108 : vector<48xf32> to vector<48x1xf32>
    %cst_33 = arith.constant 3.200000e+01 : f32
    %110 = vector.broadcast %cst_33 : f32 to vector<48x1xf32>
    %111 = arith.divf %109, %110 : vector<48x1xf32>
    %112 = vector.broadcast %104 : vector<48x1xf32> to vector<48x32xf32>
    %113 = arith.subf %100, %112 : vector<48x32xf32>
    %cst_34 = arith.constant 9.99999997E-7 : f32
    %114 = vector.broadcast %cst_34 : f32 to vector<48x1xf32>
    %115 = arith.addf %111, %114 : vector<48x1xf32>
    %116 = math.rsqrt %115 : vector<48x1xf32>
    %117 = vector.broadcast %116 : vector<48x1xf32> to vector<48x32xf32>
    %118 = arith.mulf %113, %117 : vector<48x32xf32>
    %119 = vector.broadcast %12 : vector<1x32xf32> to vector<48x32xf32>
    %120 = arith.mulf %118, %119 : vector<48x32xf32>
    %121 = vector.broadcast %13 : vector<1x32xf32> to vector<48x32xf32>
    %122 = arith.addf %120, %121 : vector<48x32xf32>
    %123 = arith.truncf %122 : vector<48x32xf32> to vector<48x32xbf16>
    %cst_35 = arith.constant dense<0.000000e+00> : vector<48x128xf32>
    %124 = tpu.matmul %123, %3, %cst_35 {dimension_numbers = #tpu.dot_dimension_numbers<[1], [0], [0], [1], [0, 0, 1, 1], [], []>} : vector<48x32xbf16>, vector<32x128xbf16>, vector<48x128xf32> -> vector<48x128xf32>
    %125 = vector.broadcast %14 : vector<1x128xf32> to vector<48x128xf32>
    %126 = arith.addf %124, %125 : vector<48x128xf32>
    %127 = arith.mulf %126, %126 : vector<48x128xf32>
    %128 = arith.mulf %126, %127 : vector<48x128xf32>
    %cst_36 = arith.constant 4.471500e-02 : f32
    %129 = vector.broadcast %cst_36 : f32 to vector<48x128xf32>
    %130 = arith.mulf %129, %128 : vector<48x128xf32>
    %131 = arith.addf %126, %130 : vector<48x128xf32>
    %cst_37 = arith.constant 0.797884583 : f32
    %132 = vector.broadcast %cst_37 : f32 to vector<48x128xf32>
    %133 = arith.mulf %132, %131 : vector<48x128xf32>
    %134 = math.tanh %133 : vector<48x128xf32>
    %cst_38 = arith.constant 1.000000e+00 : f32
    %135 = vector.broadcast %cst_38 : f32 to vector<48x128xf32>
    %136 = arith.addf %135, %134 : vector<48x128xf32>
    %cst_39 = arith.constant 5.000000e-01 : f32
    %137 = vector.broadcast %cst_39 : f32 to vector<48x128xf32>
    %138 = arith.mulf %137, %136 : vector<48x128xf32>
    %139 = arith.mulf %126, %138 : vector<48x128xf32>
    %140 = arith.truncf %139 : vector<48x128xf32> to vector<48x128xbf16>
    %cst_40 = arith.constant dense<0.000000e+00> : vector<48x32xf32>
    %141 = tpu.matmul %140, %4, %cst_40 {dimension_numbers = #tpu.dot_dimension_numbers<[1], [0], [0], [1], [0, 0, 1, 1], [], []>} : vector<48x128xbf16>, vector<128x32xbf16>, vector<48x32xf32> -> vector<48x32xf32>
    %142 = arith.addf %100, %141 : vector<48x32xf32>
    %143 = vector.broadcast %15 : vector<1x32xf32> to vector<48x32xf32>
    %144 = arith.addf %142, %143 : vector<48x32xf32>
    %145 = vector.extract_strided_slice %144 {offsets = [0, 0], sizes = [16, 32], strides = [1, 1]} : vector<48x32xf32> to vector<16x32xf32>
    %c0_41 = arith.constant 0 : index
    %c0_42 = arith.constant 0 : index
    %c0_43 = arith.constant 0 : index
    %146 = vector.load %arg4[%c0_41, %c0_42, %c0_43] : memref<2x16x32xf32, #tpu.memory_space<vmem>>, vector<1x16x32xf32>
    %147 = vector.shape_cast %146 : vector<1x16x32xf32> to vector<16x32xf32>
    %148 = vector.shape_cast %145 : vector<16x32xf32> to vector<1x16x32xf32>
    tpu.vector_store %arg4[%c0_41, %c0_42, %c0_43], %148 {strides = array<i32>} : memref<2x16x32xf32, #tpu.memory_space<vmem>>, vector<1x16x32xf32>,
    %149 = vector.extract_strided_slice %144 {offsets = [24, 0], sizes = [16, 32], strides = [1, 1]} : vector<48x32xf32> to vector<16x32xf32>
    %c1 = arith.constant 1 : index
    %c0_44 = arith.constant 0 : index
    %c0_45 = arith.constant 0 : index
    %150 = vector.load %arg4[%c1, %c0_44, %c0_45] : memref<2x16x32xf32, #tpu.memory_space<vmem>>, vector<1x16x32xf32>
    %151 = vector.shape_cast %150 : vector<1x16x32xf32> to vector<16x32xf32>
    %152 = vector.shape_cast %149 : vector<16x32xf32> to vector<1x16x32xf32>
    tpu.vector_store %arg4[%c1, %c0_44, %c0_45], %152 {strides = array<i32>} : memref<2x16x32xf32, #tpu.memory_space<vmem>>, vector<1x16x32xf32>,
    return
  }
  func.func @transform_0(%arg0: i32) -> (i32, i32) {
    %c0_i32 = arith.constant 0 : i32
    %c0_i32_0 = arith.constant 0 : i32
    %c0_i32_1 = arith.constant 0 : i32
    return %c0_i32, %c0_i32_0 : i32, i32
  }
  func.func @transform_1(%arg0: i32) -> (i32, i32) {
    %c0_i32 = arith.constant 0 : i32
    %c0_i32_0 = arith.constant 0 : i32
    %c0_i32_1 = arith.constant 0 : i32
    return %c0_i32, %c0_i32_0 : i32, i32
  }
  func.func @transform_2(%arg0: i32) -> (i32, i32) {
    %c0_i32 = arith.constant 0 : i32
    %c0_i32_0 = arith.constant 0 : i32
    %c0_i32_1 = arith.constant 0 : i32
    return %c0_i32, %c0_i32_0 : i32, i32
  }
  func.func @transform_3(%arg0: i32) -> (i32, i32, i32) {
    %c0_i32 = arith.constant 0 : i32
    %c0_i32_0 = arith.constant 0 : i32
    %c0_i32_1 = arith.constant 0 : i32
    %c0_i32_2 = arith.constant 0 : i32
    return %c0_i32, %c0_i32_0, %c0_i32_1 : i32, i32, i32
  }
}

</mosaic_0001>

<bundles_post_ra>
// kernel: vit_feature2d.1
= control target key start
LH: loop header
LB: loop body
LE: loop exit
PB: predicated region body
PF: predicated region fallthrough
CT: control target
= control target key end

     0   :  { %v1926_v1 = vmov 0.0   ;;  %vm1927_vm0 = vmmov 0   ;;  %vm116_vm1 = vcmask 523264   ;;  %s2461_s0 = inlined_call_operand.vmem [shape: bf16[48,64], index: 0, kind: input, shape index: {}]   ;;  %s2462_s1 = inlined_call_operand.vmem [shape: bf16[384,128], index: 1, kind: input, shape index: {}]   ;;  %s2463_s2 = inlined_call_operand.vmem [shape: f32[56,128], index: 2, kind: input, shape index: {}]   ;;  %s2464_s3 = inlined_call_operand.hbm [shape: f32[2,16,32], index: 3, kind: output, shape index: {}]  }
   0x1   :  { %v1814_v0 = vld [vmem:[%s2462_s1] sm:$0xff]   ;;  %1586 = vmatprep.subr.bf16.mxu0 %v1926_v1  ;;  %1606 = vmatprep.subr.bf16.mxu1 %v1926_v1  ;;  %v1815_v2 = vld [vmem:[%s2462_s1 + $0x8] sm:$0xff]   ;;  %v1816_v3 = vld [vmem:[%s2462_s1 + $0x10] sm:$0xff]  }
   0x2   :  { %1587 = vmatpush3.bf16.msra.mxu0 %v1814_v0  ;;  %1594 = vmatprep.mubr.msk.bf16.mxu0 %vm1927_vm0, %v1926_v1  ;;  %v1817_v4 = vld [vmem:[%s2462_s1 + $0x18] sm:$0xff]   ;;  %v1818_v5 = vld [vmem:[%s2461_s0] sm:$0xff]  }
   0x3   :  { %1588 = vmatprep.subr.bf16.mxu0 %v1926_v1  ;;  %1610 = vmatprep.mubr.msk.bf16.mxu1 %vm1927_vm0, %v1926_v1 }
   0x6   :  { %1589 = vmatpush3.bf16.msra.mxu0 %v1815_v2 }
   0x7   :  { %1590 = vmatprep.subr.bf16.mxu0 %v1926_v1 }
   0xa   :  { %1591 = vmatpush3.bf16.msra.mxu0 %v1816_v3 }
   0xb   :  { %1592 = vmatprep.subr.bf16.mxu0 %v1926_v1 }
   0xe   :  { %1593 = vmatpush3.bf16.msra.mxu0 %v1817_v4 }
  0x11   :  { %1595 = vmatmul.mubr.msk.bf16.vlgmr.msra.gmra.mrb[0].mxu0 %vm116_vm1, %v1818_v5 }
  0x12   :  { %1598 = vmatprep.mubr.msk.bf16.mxu0 %vm1927_vm0, %v1926_v1 }
  0x13   :  { %8 = vsyncpa [#allocation3], 0  ;;  %v1819_v6 = vld [vmem:[%s2461_s0 + $0x8] sm:$0xff]   ;;  %v1820_v7 = vld [vmem:[%s2461_s0 + $0x10] sm:$0xff]   ;;  %vm183_vm2 = vcmask 261120   ;;  %s1928_s18 = smov 32  }
  0x14   :  { %v64_v8 = vld [vmem:[%s2463_s2] sm:$0xff]  ;;  %v65_v10 = vld [vmem:[%s2463_s2 + $0x8] sm:$0xff]  ;;  %v66_v17 = vld [vmem:[%s2463_s2 + $0x10] sm:$0xff]  ;;  %s1929_s29 = smov 96   ;;  %vm373_vm3 = vcmask 1043456   ;;  %s1930_s0 = smov 64  }
  0x15   :  { %v67_v20 = vld [vmem:[%s2463_s2 + $0x18] sm:$0xff]  ;;  %v68_v27 = vld [vmem:[%s2463_s2 + $0x20] sm:$0xff]  ;;  %v69_v30 = vld [vmem:[%s2463_s2 + $0x28] sm:$0xff]  ;;  %vm553_vm4 = vcmask 785408  }
  0x16   :  { %v1821_v5 = vld [vmem:[%s2462_s1 + $0x20] sm:$0xff]  }
  0x17   :  { %1607 = vmatpush3.bf16.msra.mxu1 %v1821_v5 }
  0x18   :  { %1608 = vmatprep.subr.bf16.mxu1 %v1926_v1 }
  0x19   :  { %1599 = vmatmul.mubr.msk.bf16.gmra.mrb[4].mxu0 %vm116_vm1, %v1819_v6  ;;  %v1822_v6 = vld [vmem:[%s2462_s1 + $0x28] sm:$0xff]  }
  0x1a   :  { %1602 = vmatprep.mubr.msk.bf16.mxu0 %vm1927_vm0, %v1926_v1 }
  0x1b   :  { %1609 = vmatpush3.bf16.msra.mxu1 %v1822_v6 }
  0x21   :  { %1603 = vmatmul.mubr.msk.bf16.gmra.mrb[8].mxu0 %vm116_vm1, %v1820_v7  ;;  %v2076_v7 = vld [vmem:[%s2462_s1 + $0x98] sm:$0xff]  }
  0xe4   :  { %v160_v9 = vpop.f32.mrb[0].mxu0 }
  0xe5   :  { %v1994_v11 = vadd.f32 %v160_v9, %v64_v8  ;;  %v1596_v12 = vpop.f32.mrb[1].mxu0  ;;  %v2081_v8 = vld [vmem:[%s2462_s1 + $0x90] sm:$0xff]   ;;  %v2087_v9 = vld [vmem:[%s2462_s1 + $0xa0] sm:$0xff]  }
  0xe6   :  { %v163_v13 = vpop.f32.mrb[2].mxu0  ;;  %v2099_v12 = vld [vmem:[%s2462_s1 + $0xa8] sm:$0xff]  }
  0xe7   :  { %v1996_v14 = vadd.f32 %v163_v13, %v65_v10  ;;  %v1597_v15 = vpop.f32.mrb[3].mxu0  ;;  %v184_v16 = vsel %vm183_vm2, %v1994_v11, 0.0  ;;  %v2093_v10 = vld [vmem:[%s2462_s1 + $0xb0] sm:$0xff]   ;;  %v2106_v13 = vld [vmem:[%s2462_s1 + $0xb8] sm:$0xff]  }
  0xe8   :  { %185 = vadd.xlane.f32.xlu0 %v184_v16 }
  0xe9   :  { %v187_v18 = vsel %vm183_vm2, %v1996_v14, 0.0 }
  0xec   :  { %188 = vadd.xlane.f32.xlu0 %v187_v18  ;;  %v168_v19 = vpop.f32.mrb[4].mxu0 }
  0xed   :  { %v2008_v21 = vadd.f32 %v168_v19, %v66_v17  ;;  %v1600_v22 = vpop.f32.mrb[5].mxu0  ;;  %v263_v19 = vlaneseq }
  0xee   :  { %v171_v23 = vpop.f32.mrb[6].mxu0 }
  0xef   :  { %v2010_v24 = vadd.f32 %v171_v23, %v67_v20  ;;  %v1601_v25 = vpop.f32.mrb[7].mxu0  ;;  %v190_v26 = vsel %vm183_vm2, %v2008_v21, 0.0 }
  0xf0   :  { %191 = vadd.xlane.f32.xlu1 %v190_v26  ;;  %v2109_v25 = vshrl.u32 %v263_v19, 7 }
  0xf1   :  { %v193_v28 = vsel %vm183_vm2, %v2010_v24, 0.0 }
  0xf4   :  { %194 = vadd.xlane.f32.xlu1 %v193_v28  ;;  %v176_v29 = vpop.f32.mrb[8].mxu0 }
  0xf5   :  { %v2022_v31 = vadd.f32 %v176_v29, %v68_v27  ;;  %v1604_v32 = vpop.f32.mrb[9].mxu0  ;;  %v265_v29 = vsub.s32 0, %v2109_v25 }
  0xf6   :  { %v179_v33 = vpop.f32.mrb[10].mxu0  ;;  %v2115_v32 = vld [vmem:[%s2463_s2 + $0x30] sm:$0xff] }
  0xf7   :  { %v2024_v34 = vadd.f32 %v179_v33, %v69_v30  ;;  %v196_v35 = vsel %vm183_vm2, %v2022_v31, 0.0  ;;  %v1605_v36 = vpop.f32.mrb[11].mxu0 }
  0xf8   :  { %197 = vadd.xlane.f32.xlu0 %v196_v35 }
  0xf9   :  { %v199_v37 = vsel %vm183_vm2, %v2024_v34, 0.0 }
  0xfa   :  { %200 = vadd.xlane.f32.xlu1 %v199_v37 }
 0x175   :  { %v186_v38 = vpop.xlane.xlu0 %185 }
 0x176   :  { %v203_v39 = vmul.f32 0.03125, %v186_v38  ;;  %v266_v38 = vrot.slane %v2115_v32, %v265_v29 }
 0x178   :  { %v2031_v40 = vsub.f32 %v1994_v11, %v203_v39  ;;  %v275_v39 = vsub.s32 1, %v2109_v25 }
 0x179   :  { %v189_v41 = vpop.xlane.xlu0 %188 }
 0x17a   :  { %v204_v42 = vmul.f32 0.03125, %v189_v41  ;;  %v215_v43 = vmul.f32 %v2031_v40, %v2031_v40 }
 0x17c   :  { %v2036_v44 = vsub.f32 %v1996_v14, %v204_v42  ;;  %v221_v45 = vsel %vm183_vm2, %v215_v43, 0.0 }
 0x17d   :  { %v192_v46 = vpop.xlane.xlu1 %191  ;;  %222 = vadd.xlane.f32.xlu0 %v221_v45 }
 0x17e   :  { %v205_v47 = vmul.f32 0.03125, %v192_v46  ;;  %v216_v48 = vmul.f32 %v2036_v44, %v2036_v44 }
 0x180   :  { %v2042_v49 = vsub.f32 %v2008_v21, %v205_v47  ;;  %v224_v50 = vsel %vm183_vm2, %v216_v48, 0.0 }
 0x181   :  { %v195_v51 = vpop.xlane.xlu1 %194  ;;  %225 = vadd.xlane.f32.xlu1 %v224_v50  ;;  %v276_v50 = vrot.slane %v2115_v32, %v275_v39 }
 0x182   :  { %v206_v52 = vmul.f32 0.03125, %v195_v51  ;;  %v217_v53 = vmul.f32 %v2042_v49, %v2042_v49 }
 0x184   :  { %v2048_v54 = vsub.f32 %v2010_v24, %v206_v52  ;;  %v227_v55 = vsel %vm183_vm2, %v217_v53, 0.0 }
 0x185   :  { %228 = vadd.xlane.f32.xlu0 %v227_v55  ;;  %v198_v56 = vpop.xlane.xlu0 %197 }
 0x186   :  { %v207_v57 = vmul.f32 0.03125, %v198_v56  ;;  %v218_v58 = vmul.f32 %v2048_v54, %v2048_v54 }
 0x187   :  { %v201_v59 = vpop.xlane.xlu1 %200 }
 0x188   :  { %v2054_v60 = vsub.f32 %v2022_v31, %v207_v57  ;;  %v208_v61 = vmul.f32 0.03125, %v201_v59  ;;  %v230_v62 = vsel %vm183_vm2, %v218_v58, 0.0 }
 0x189   :  { %231 = vadd.xlane.f32.xlu1 %v230_v62 }
 0x18a   :  { %v2058_v63 = vsub.f32 %v2024_v34, %v208_v61  ;;  %v219_v0 = vmul.f32 %v2054_v60, %v2054_v60 }
 0x18c   :  { %v233_v2 = vsel %vm183_vm2, %v219_v0, 0.0  ;;  %v220_v3 = vmul.f32 %v2058_v63, %v2058_v63 }
 0x18d   :  { %234 = vadd.xlane.f32.xlu0 %v233_v2 }
 0x18e   :  { %v236_v4 = vsel %vm183_vm2, %v220_v3, 0.0 }
 0x18f   :  { %237 = vadd.xlane.f32.xlu1 %v236_v4 }
 0x1a0   :  { %415 = vrot.lane.b32.xlu1 %v2076_v7, %s1928_s18 }
 0x1a3   :  { %413 = vrot.lane.b32.xlu0 %v2081_v8, %s1928_s18 }
 0x1a4   :  { %417 = vrot.lane.b32.xlu1 %v2087_v9, %s1928_s18 }
 0x1a7   :  { %421 = vrot.lane.b32.xlu0 %v2093_v10, %s1928_s18 }
 0x1a8   :  { %419 = vrot.lane.b32.xlu1 %v2099_v12, %s1928_s18 }
 0x1ac   :  { %423 = vrot.lane.b32.xlu1 %v2106_v13, %s1928_s18 }
 0x20a   :  { %v223_v15 = vpop.xlane.xlu0 %222 }
 0x20b   :  { %v239_v16 = vmul.f32 0.03125, %v223_v15 }
 0x20d   :  { %v245_v17 = vadd.f32 1e-06, %v239_v16 }
 0x20e   :  { %v226_v18 = vpop.xlane.xlu1 %225 }
 0x20f   :  { %1841 = vrsqrt.f32 %v245_v17  ;;  %v240_v20 = vmul.f32 0.03125, %v226_v18 }
 0x211   :  { %v246_v22 = vadd.f32 1e-06, %v240_v20 }
 0x212   :  { %v229_v23 = vpop.xlane.xlu0 %228 }
 0x213   :  { %1843 = vrsqrt.f32 %v246_v22  ;;  %v241_v26 = vmul.f32 0.03125, %v229_v23 }
 0x215   :  { %v247_v27 = vadd.f32 1e-06, %v241_v26 }
 0x216   :  { %v232_v28 = vpop.xlane.xlu1 %231 }
 0x217   :  { %1845 = vrsqrt.f32 %v247_v27  ;;  %v242_v30 = vmul.f32 0.03125, %v232_v28 }
 0x219   :  { %v1842_v33 = vpop.eup %1841  ;;  %v248_v35 = vadd.f32 1e-06, %v242_v30 }
 0x21a   :  { %v257_v36 = vmul.f32 %v1842_v33, %v2031_v40  ;;  %v235_v37 = vpop.xlane.xlu0 %234 }
 0x21b   :  { %1847 = vrsqrt.f32 %v248_v35  ;;  %v243_v41 = vmul.f32 0.03125, %v235_v37 }
 0x21c   :  { %v238_v42 = vpop.xlane.xlu1 %237  ;;  %v267_v48 = vmul.f32 %v266_v38, %v257_v36 }
 0x21d   :  { %v1844_v43 = vpop.eup %1843  ;;  %v249_v45 = vadd.f32 1e-06, %v243_v41  ;;  %v244_v46 = vmul.f32 0.03125, %v238_v42 }
 0x21e   :  { %v258_v47 = vmul.f32 %v1844_v43, %v2036_v44  ;;  %v277_v55 = vadd.f32 %v276_v50, %v267_v48  ;;  %v414_v27 = vpop.permute.xlu0 %413 }
 0x21f   :  { %1849 = vrsqrt.f32 %v249_v45  ;;  %v250_v51 = vadd.f32 1e-06, %v244_v46 }
 0x220   :  { %v268_v52 = vmul.f32 %v266_v38, %v258_v47  ;;  %v416_v28 = vpop.permute.xlu1 %415 }
 0x221   :  { %v1846_v40 = vpop.eup %1845  ;;  %1851 = vrsqrt.f32 %v250_v51 }
 0x222   :  { %v259_v53 = vmul.f32 %v1846_v40, %v2042_v49  ;;  %v278_v56 = vadd.f32 %v276_v50, %v268_v52 }
 0x224   :  { %v283_v57 = vpack.c.bf16 %v278_v56, %v277_v55  ;;  %v269_v61 = vmul.f32 %v266_v38, %v259_v53  ;;  %v418_v37 = vpop.permute.xlu1 %417  ;;  %v422_v55 = vpop.permute.xlu0 %421 }
 0x225   :  { %v1848_v58 = vpop.eup %1847 }
 0x226   :  { %v260_v59 = vmul.f32 %v1848_v58, %v2048_v54  ;;  %1611 = vmatmul.mubr.msk.bf16.vlgmr.msra.gmra.mrb[0].mxu1 %vm183_vm2, %v283_v57  ;;  %v279_v2 = vadd.f32 %v276_v50, %v269_v61 }
 0x227   :  { %1614 = vmatprep.mubr.msk.bf16.mxu1 %vm1927_vm0, %v1926_v1 }
 0x228   :  { %v270_v44 = vmul.f32 %v266_v38, %v260_v59 }
 0x229   :  { %v1850_v62 = vpop.eup %1849 }
 0x22a   :  { %v261_v0 = vmul.f32 %v1850_v62, %v2054_v60  ;;  %v280_v3 = vadd.f32 %v276_v50, %v270_v44  ;;  %v288_v60 = vsub.s32 2, %v2109_v25 }
 0x22b   :  { %v1852_v4 = vpop.eup %1851 }
 0x22c   :  { %v262_v49 = vmul.f32 %v1852_v4, %v2058_v63  ;;  %v284_v5 = vpack.c.bf16 %v280_v3, %v279_v2  ;;  %v271_v6 = vmul.f32 %v266_v38, %v261_v0  ;;  %v289_v18 = vrot.slane %v2115_v32, %v288_v60 }
 0x22e   :  { %1615 = vmatmul.mubr.msk.bf16.gmra.mrb[4].mxu1 %vm183_vm2, %v284_v5  ;;  %v272_v54 = vmul.f32 %v266_v38, %v262_v49  ;;  %v281_v16 = vadd.f32 %v276_v50, %v271_v6 }
 0x22f   :  { %1618 = vmatprep.mubr.msk.bf16.mxu1 %vm1927_vm0, %v1926_v1 }
 0x230   :  { %v282_v15 = vadd.f32 %v276_v50, %v272_v54  ;;  %v420_v50 = vpop.permute.xlu1 %419 }
 0x232   :  { %v285_v17 = vpack.c.bf16 %v282_v15, %v281_v16 }
 0x234   :  { %v424_v61 = vpop.permute.xlu1 %423 }
 0x236   :  { %1619 = vmatmul.mubr.msk.bf16.gmra.mrb[8].mxu1 %vm183_vm2, %v285_v17 }
 0x2f9   :  { %v345_v19 = vpop.f32.mrb[0].mxu1 }
 0x2fa   :  { %v1612_v20 = vpop.f32.mrb[1].mxu1  ;;  %v346_v22 = vadd.f32 %v345_v19, %v289_v18 }
 0x2fb   :  { %v348_v63 = vpop.f32.mrb[2].mxu1 }
 0x2fc   :  { %v349_v23 = vadd.f32 %v348_v63, %v289_v18  ;;  %v1613_v26 = vpop.f32.mrb[3].mxu1 }
 0x2fe   :  { %v2135_v29 = vpack.c.bf16 %v349_v23, %v346_v22 }
 0x300   :  { %v431_v30 = vmul.bf16 %v414_v27, %v2135_v29  ;;  %1634 = vmatprep.mubr.msk.bf16.mxu1 %vm183_vm2, %v2135_v29  ;;  %v374_v43 = vrot.slane %v2135_v29, 4  ;;  %v434_v59 = vmul.bf16 %v420_v50, %v2135_v29 }
 0x301   :  { %v353_v33 = vpop.f32.mrb[4].mxu1 }
 0x302   :  { %467 = vrot.lane.b32.xlu0 %v431_v30, %s1929_s29  ;;  %v1616_v35 = vpop.f32.mrb[5].mxu1  ;;  %v354_v38 = vadd.f32 %v353_v33, %v289_v18 }
 0x303   :  { %v356_v36 = vpop.f32.mrb[6].mxu1 }
 0x304   :  { %v357_v39 = vadd.f32 %v356_v36, %v289_v18  ;;  %v1617_v41 = vpop.f32.mrb[7].mxu1 }
 0x306   :  { %v2141_v42 = vpack.c.bf16 %v357_v39, %v354_v38 }
 0x308   :  { %v2146_v45 = vsel %vm373_vm3, %v2141_v42, %v374_v43  ;;  %v375_v46 = vrot.slane %v2141_v42, 4 }
 0x309   :  { %v361_v47 = vpop.f32.mrb[8].mxu1  ;;  %v432_v48 = vmul.bf16 %v416_v28, %v2146_v45  ;;  %v435_v62 = vmul.bf16 %v422_v55, %v2146_v45 }
 0x30a   :  { %v1620_v51 = vpop.f32.mrb[9].mxu1  ;;  %v2151_v52 = vsel %vm373_vm3, %v374_v43, %v375_v46  ;;  %v362_v56 = vadd.f32 %v361_v47, %v289_v18 }
 0x30b   :  { %v364_v40 = vpop.f32.mrb[10].mxu1  ;;  %469 = vrot.lane.b32.xlu1 %v432_v48, %s1929_s29  ;;  %v433_v53 = vmul.bf16 %v418_v37, %v2151_v52  ;;  %v436_v2 = vmul.bf16 %v424_v61, %v2151_v52 }
 0x30c   :  { %v365_v57 = vadd.f32 %v364_v40, %v289_v18  ;;  %v1621_v58 = vpop.f32.mrb[11].mxu1 }
 0x30d   :  { %471 = vrot.lane.b32.xlu0 %v433_v53, %s1929_s29 }
 0x30e   :  { %v2157_v44 = vpack.c.bf16 %v365_v57, %v362_v56 }
 0x30f   :  { %473 = vrot.lane.b32.xlu1 %v434_v59, %s1929_s29 }
 0x310   :  { %v2162_v0 = vrot.slane %v2157_v44, 4  ;;  %v724_v6 = vmul.bf16 %v418_v37, %v2157_v44  ;;  %v727_v16 = vmul.bf16 %v424_v61, %v2157_v44 }
 0x311   :  { %475 = vrot.lane.b32.xlu0 %v435_v62, %s1929_s29 }
 0x312   :  { %v2168_v3 = vsel %vm373_vm3, %v375_v46, %v2162_v0  ;;  %v2173_v4 = vsel %vm373_vm3, %v2162_v0, %v2141_v42 }
 0x313   :  { %477 = vrot.lane.b32.xlu1 %v436_v2, %s1929_s29  ;;  %v722_v49 = vmul.bf16 %v2168_v3, %v414_v27  ;;  %v723_v5 = vmul.bf16 %v2173_v4, %v416_v28  ;;  %v725_v54 = vmul.bf16 %v2168_v3, %v420_v50  ;;  %v726_v15 = vmul.bf16 %v2173_v4, %v422_v55 }
 0x315   :  { %740 = vrot.lane.b32.xlu0 %v722_v49, %s1929_s29 }
 0x317   :  { %742 = vrot.lane.b32.xlu1 %v723_v5, %s1929_s29 }
 0x319   :  { %744 = vrot.lane.b32.xlu0 %v724_v6, %s1929_s29 }
 0x31b   :  { %746 = vrot.lane.b32.xlu1 %v725_v54, %s1929_s29 }
 0x31d   :  { %748 = vrot.lane.b32.xlu0 %v726_v15, %s1929_s29 }
 0x31f   :  { %750 = vrot.lane.b32.xlu1 %v727_v16, %s1929_s29 }
 0x321   :  { %437 = vrot.lane.b32.xlu0 %v2081_v8, %s1930_s0 }
 0x323   :  { %439 = vrot.lane.b32.xlu1 %v2076_v7, %s1930_s0 }
 0x325   :  { %441 = vrot.lane.b32.xlu0 %v2087_v9, %s1930_s0 }
 0x327   :  { %443 = vrot.lane.b32.xlu1 %v2099_v12, %s1930_s0 }
 0x329   :  { %445 = vrot.lane.b32.xlu0 %v2093_v10, %s1930_s0 }
 0x32b   :  { %447 = vrot.lane.b32.xlu1 %v2106_v13, %s1930_s0 }
 0x374   :  { %v468_v17 = vpop.permute.xlu0 %467 }
 0x375   :  { %v485_v60 = vsel %vm183_vm2, %v468_v17, 0  ;;  %1794 = vmatprep.subr.msk.bf16.mxu1 %vm183_vm2, %v468_v17 }
 0x376   :  { %1623 = vmatpush3.bf16.xpose.msra.mxu1 %v485_v60 }
 0x37d   :  { %v470_v18 = vpop.permute.xlu1 %469 }
 0x37e   :  { %v488_v19 = vsel %vm183_vm2, %v470_v18, 0  ;;  %1795 = vmatprep.subr.msk.bf16.mxu1 %vm183_vm2, %v470_v18 }
 0x37f   :  { %v472_v20 = vpop.permute.xlu0 %471  ;;  %1625 = vmatpush3.bf16.xpose.msra.mxu1 %v488_v19 }
 0x380   :  { %1796 = vmatprep.subr.msk.bf16.mxu1 %vm183_vm2, %v472_v20  ;;  %v491_v26 = vsel %vm183_vm2, %v472_v20, 0 }
 0x381   :  { %v474_v63 = vpop.permute.xlu1 %473 }
 0x382   :  { %v494_v35 = vsel %vm183_vm2, %v474_v63, 0 }
 0x383   :  { %v476_v22 = vpop.permute.xlu0 %475 }
 0x384   :  { %v497_v43 = vsel %vm183_vm2, %v476_v22, 0 }
 0x385   :  { %v478_v23 = vpop.permute.xlu1 %477 }
 0x386   :  { %v500_v55 = vsel %vm183_vm2, %v478_v23, 0 }
 0x387   :  { %v741_v27 = vpop.permute.xlu0 %740  ;;  %1627 = vmatpush3.bf16.xpose.msra.mxu1 %v491_v26 }
 0x388   :  { %1797 = vmatprep.subr.msk.bf16.mxu1 %vm183_vm2, %v474_v63  ;;  %v758_v58 = vsel %vm183_vm2, %v741_v27, 0 }
 0x389   :  { %v743_v28 = vpop.permute.xlu1 %742 }
 0x38b   :  { %v745_v30 = vpop.permute.xlu0 %744 }
 0x38d   :  { %v747_v33 = vpop.permute.xlu1 %746 }
 0x38f   :  { %v749_v36 = vpop.permute.xlu0 %748  ;;  %1629 = vmatpush3.bf16.xpose.msra.mxu1 %v494_v35 }
 0x390   :  { %1798 = vmatprep.subr.msk.bf16.mxu1 %vm183_vm2, %v476_v22  ;;  %v770_v61 = vsel %vm183_vm2, %v749_v36, 0 }
 0x391   :  { %v751_v37 = vpop.permute.xlu1 %750 }
 0x392   :  { %v773_v62 = vsel %vm183_vm2, %v751_v37, 0 }
 0x393   :  { %v2209_v38 = vpop.permute.xlu0 %437 }
 0x394   :  { %v455_v39 = vmul.bf16 %v2209_v38, %v2135_v29 }
 0x395   :  { %v440_v41 = vpop.permute.xlu1 %439 }
 0x396   :  { %v456_v46 = vmul.bf16 %v440_v41, %v2146_v45  ;;  %580 = vrot.lane.b32.xlu0 %v455_v39, %s1930_s0 }
 0x397   :  { %v442_v47 = vpop.permute.xlu0 %441  ;;  %1631 = vmatpush3.bf16.xpose.msra.mxu1 %v497_v43 }
 0x398   :  { %1799 = vmatprep.subr.msk.bf16.mxu1 %vm183_vm2, %v478_v23  ;;  %582 = vrot.lane.b32.xlu1 %v456_v46, %s1930_s0  ;;  %v457_v50 = vmul.bf16 %v442_v47, %v2151_v52  ;;  %v730_v59 = vmul.bf16 %v442_v47, %v2157_v44 }
 0x399   :  { %v2218_v48 = vpop.permute.xlu1 %443 }
 0x39a   :  { %v458_v51 = vmul.bf16 %v2218_v48, %v2135_v29  ;;  %v729_v29 = vmul.bf16 %v2173_v4, %v440_v41  ;;  %v731_v26 = vmul.bf16 %v2168_v3, %v2218_v48 }
 0x39b   :  { %v2223_v40 = vpop.permute.xlu0 %445 }
 0x39c   :  { %584 = vrot.lane.b32.xlu1 %v457_v50, %s1930_s0  ;;  %586 = vrot.lane.b32.xlu0 %v458_v51, %s1930_s0  ;;  %v459_v56 = vmul.bf16 %v2223_v40, %v2146_v45  ;;  %v761_v45 = vsel %vm183_vm2, %v743_v28, 0 }
 0x39d   :  { %v2227_v53 = vpop.permute.xlu1 %447 }
 0x39e   :  { %v460_v57 = vmul.bf16 %v2227_v53, %v2151_v52  ;;  %v764_v52 = vsel %vm183_vm2, %v745_v30, 0 }
 0x39f   :  { %1633 = vmatpush3.bf16.xpose.msra.mxu1 %v500_v55 }
 0x3a0   :  { %1800 = vmatprep.subr.msk.bf16.mxu1 %vm183_vm2, %v741_v27  ;;  %588 = vrot.lane.b32.xlu1 %v459_v56, %s1930_s0  ;;  %v728_v27 = vmul.bf16 %v2168_v3, %v2209_v38  ;;  %v732_v38 = vmul.bf16 %v2173_v4, %v2223_v40 }
 0x3a1   :  { %590 = vrot.lane.b32.xlu0 %v460_v57, %s1930_s0 }
 0x3a4   :  { %854 = vrot.lane.b32.xlu1 %v729_v29, %s1930_s0 }
 0x3a6   :  { %1635 = vmatmul.mubr.msk.bf16.vlgmr.msra.gmra.mrb[12].mxu1 %vm183_vm2, %v2141_v42  ;;  %v767_v42 = vsel %vm183_vm2, %v747_v33, 0 }
 0x3a7   :  { %1671 = vmatpush3.bf16.xpose.msra.mxu1 %v758_v58  ;;  %1682 = vmatprep.mubr.msk.bf16.mxu1 %vm183_vm2, %v2168_v3  ;;  %v733_v3 = vmul.bf16 %v2227_v53, %v2157_v44 }
 0x3a8   :  { %1801 = vmatprep.subr.msk.bf16.mxu1 %vm183_vm2, %v743_v28  ;;  %856 = vrot.lane.b32.xlu1 %v730_v59, %s1930_s0 }
 0x3af   :  { %1673 = vmatpush3.bf16.xpose.msra.mxu1 %v761_v45 }
 0x3b0   :  { %1802 = vmatprep.subr.msk.bf16.mxu1 %vm183_vm2, %v745_v30 }
 0x3b7   :  { %1675 = vmatpush3.bf16.xpose.msra.mxu1 %v764_v52 }
 0x3b8   :  { %1803 = vmatprep.subr.msk.bf16.mxu1 %vm183_vm2, %v747_v33 }
 0x3bf   :  { %1677 = vmatpush3.bf16.xpose.msra.mxu1 %v767_v42 }
 0x3c0   :  { %1804 = vmatprep.subr.msk.bf16.mxu1 %vm183_vm2, %v749_v36 }
 0x3c7   :  { %1679 = vmatpush3.bf16.xpose.msra.mxu1 %v770_v61 }
 0x3c8   :  { %1805 = vmatprep.subr.msk.bf16.mxu1 %vm183_vm2, %v751_v37 }
 0x3cf   :  { %1681 = vmatpush3.bf16.xpose.msra.mxu1 %v773_v62 }
 0x3d0   :  { %1718 = vmatprep.subr.bf16.mxu1 %v1926_v1 }
 0x3d6   :  { %1683 = vmatmul.mubr.msk.bf16.vlgmr.msra.gmra.mrb[16].mxu1 %vm183_vm2, %v2162_v0 }
 0x3d7   :  { %1722 = vmatprep.mubr.msk.bf16.mxu1 %vm1927_vm0, %v1926_v1 }
 0x408   :  { %v581_v2 = vpop.permute.xlu0 %580 }
 0x409   :  { %1638 = vmatprep.subr.bf16.mxu0 %v581_v2 }
 0x40a   :  { %1639 = vmatpush3.bf16.msra.mxu0 %v581_v2  ;;  %v583_v49 = vpop.permute.xlu1 %582 }
 0x40b   :  { %1640 = vmatprep.subr.bf16.mxu0 %v583_v49 }
 0x40e   :  { %1641 = vmatpush3.bf16.msra.mxu0 %v583_v49  ;;  %v585_v5 = vpop.permute.xlu1 %584  ;;  %v587_v6 = vpop.permute.xlu0 %586 }
 0x40f   :  { %1642 = vmatprep.subr.bf16.mxu0 %v585_v5 }
 0x412   :  { %1643 = vmatpush3.bf16.msra.mxu0 %v585_v5  ;;  %v589_v54 = vpop.permute.xlu1 %588 }
 0x413   :  { %1644 = vmatprep.subr.bf16.mxu0 %v587_v6  ;;  %v591_v15 = vpop.permute.xlu0 %590 }
 0x416   :  { %1645 = vmatpush3.bf16.msra.mxu0 %v587_v6  ;;  %v855_v47 = vpop.permute.xlu1 %854 }
 0x417   :  { %1646 = vmatprep.subr.bf16.mxu0 %v589_v54 }
 0x41a   :  { %1647 = vmatpush3.bf16.msra.mxu0 %v589_v54  ;;  %v857_v48 = vpop.permute.xlu1 %856 }
 0x41b   :  { %1648 = vmatprep.subr.bf16.mxu0 %v591_v15 }
 0x41e   :  { %1649 = vmatpush3.bf16.msra.mxu0 %v591_v15 }
 0x41f   :  { %1654 = vmatprep.subr.bf16.mxu0 %v2081_v8 }
 0x479   :  { %v1636_v0 = vpop.f32.mrb[12].mxu1 }
 0x47a   :  { %v552_v16 = vmul.f32 0.35355338, %v1636_v0  ;;  %v536_v17 = vpop.f32.mrb[13].mxu1 }
 0x47b   :  { %v1637_v60 = vpop.f32.mrb[14].mxu1  ;;  %v550_v18 = vmul.f32 0.35355338, %v536_v17 }
 0x47c   :  { %v539_v19 = vpop.f32.mrb[15].mxu1  ;;  %v560_v20 = vsel %vm553_vm4, %v552_v16, -inf }
 0x47d   :  { %v551_v63 = vmul.f32 0.35355338, %v539_v19  ;;  %561 = vmax.xlane.f32.xlu0 %v560_v20  ;;  %v554_v23 = vsel %vm553_vm4, %v550_v18, -inf }
 0x47f   :  { %v557_v22 = vsel %vm553_vm4, %v551_v63, -inf }
 0x480   :  { %558 = vmax.xlane.f32.xlu1 %v557_v22 }
 0x481   :  { %555 = vmax.xlane.f32.xlu0 %v554_v23 }
 0x491   :  { %858 = vrot.lane.b32.xlu1 %v731_v26, %s1930_s0 }
 0x497   :  { %852 = vrot.lane.b32.xlu0 %v728_v27, %s1930_s0 }
 0x4a9   :  { %v1684_v28 = vpop.f32.mrb[16].mxu1 }
 0x4aa   :  { %v809_v30 = vpop.f32.mrb[17].mxu1  ;;  %v825_v37 = vmul.f32 0.35355338, %v1684_v28 }
 0x4ab   :  { %v1685_v33 = vpop.f32.mrb[18].mxu1  ;;  %v823_v36 = vmul.f32 0.35355338, %v809_v30 }
 0x4ac   :  { %v812_v35 = vpop.f32.mrb[19].mxu1  ;;  %v832_v43 = vsel %vm553_vm4, %v825_v37, -inf }
 0x4ad   :  { %v826_v39 = vsel %vm553_vm4, %v823_v36, -inf  ;;  %v2272_v41 = vmul.f32 0.35355338, %v812_v35 }
 0x4af   :  { %v829_v46 = vsel %vm553_vm4, %v2272_v41, -inf }
 0x4b5   :  { %827 = vmax.xlane.f32.xlu1 %v826_v39 }
 0x4b6   :  { %833 = vmax.xlane.f32.xlu0 %v832_v43 }
 0x4ba   :  { %830 = vmax.xlane.f32.xlu0 %v829_v46 }
 0x4c6   :  { %862 = vrot.lane.b32.xlu1 %v733_v3, %s1930_s0 }
 0x4d0   :  { %860 = vrot.lane.b32.xlu0 %v732_v38, %s1930_s0 }
 0x50a   :  { %v562_v50 = vpop.xlane.xlu0 %561 }
 0x50b   :  { %v565_v51 = vsub.f32 %v552_v16, %v562_v50 }
 0x50d   :  { %v570_v55 = vmul.f32 1.442695, %v565_v51  ;;  %v559_v56 = vpop.xlane.xlu1 %558 }
 0x50e   :  { %v564_v57 = vsub.f32 %v551_v63, %v559_v56  ;;  %v556_v29 = vpop.xlane.xlu0 %555 }
 0x50f   :  { %v563_v58 = vsub.f32 %v550_v18, %v556_v29  ;;  %1853 = vpow2.f32 %v570_v55 }
 0x510   :  { %v568_v59 = vmul.f32 1.442695, %v564_v57 }
 0x511   :  { %v566_v45 = vmul.f32 1.442695, %v563_v58  ;;  %v859_v61 = vpop.permute.xlu1 %858 }
 0x512   :  { %1855 = vpow2.f32 %v568_v59  ;;  %v853_v42 = vpop.permute.xlu0 %852 }
 0x513   :  { %1857 = vpow2.f32 %v566_v45 }
 0x519   :  { %v1854_v44 = vpop.eup %1853 }
 0x51a   :  { %v573_v40 = vpack.c.bf16 %v1854_v44, %v1854_v44 }
 0x51c   :  { %v1856_v53 = vpop.eup %1855 }
 0x51d   :  { %v1858_v52 = vpop.eup %1857 }
 0x51e   :  { %v572_v4 = vpack.c.bf16 %v1856_v53, %v1858_v52 }
 0x520   :  { %1650 = vmatprep.mubr.msk.bf16.mxu0 %vm553_vm4, %v572_v4 }
 0x521   :  { %1651 = vmatmul.mubr.msk.bf16.vlgmr.msra.gmra.mrb[12].mxu0 %vm553_vm4, %v573_v40 }
 0x522   :  { %1655 = vmatpush3.bf16.msra.mxu0 %v2081_v8  ;;  %1666 = vmatprep.mubr.msk.bf16.mxu0 %vm553_vm4, %v572_v4 }
 0x523   :  { %1656 = vmatprep.subr.bf16.mxu0 %v2076_v7 }
 0x526   :  { %1657 = vmatpush3.bf16.msra.mxu0 %v2076_v7 }
 0x527   :  { %1658 = vmatprep.subr.bf16.mxu0 %v2087_v9 }
 0x52a   :  { %1659 = vmatpush3.bf16.msra.mxu0 %v2087_v9 }
 0x52b   :  { %1660 = vmatprep.subr.bf16.mxu0 %v2099_v12 }
 0x52e   :  { %1661 = vmatpush3.bf16.msra.mxu0 %v2099_v12 }
 0x52f   :  { %1662 = vmatprep.subr.bf16.mxu0 %v2093_v10 }
 0x532   :  { %1663 = vmatpush3.bf16.msra.mxu0 %v2093_v10 }
 0x533   :  { %1664 = vmatprep.subr.bf16.mxu0 %v2106_v13 }
 0x536   :  { %1665 = vmatpush3.bf16.msra.mxu0 %v2106_v13 }
 0x537   :  { %1686 = vmatprep.subr.bf16.mxu0 %v853_v42 }
 0x539   :  { %1667 = vmatmul.mubr.msk.bf16.vlgmr.msra.gmra.mrb[16].mxu0 %vm553_vm4, %v573_v40 }
 0x53a   :  { %1687 = vmatpush3.bf16.msra.mxu0 %v853_v42 }
 0x53b   :  { %1688 = vmatprep.subr.bf16.mxu0 %v855_v47 }
 0x53e   :  { %1689 = vmatpush3.bf16.msra.mxu0 %v855_v47 }
 0x53f   :  { %1690 = vmatprep.subr.bf16.mxu0 %v857_v48 }
 0x542   :  { %1691 = vmatpush3.bf16.msra.mxu0 %v857_v48  ;;  %v828_v62 = vpop.xlane.xlu1 %827 }
 0x543   :  { %1692 = vmatprep.subr.bf16.mxu0 %v859_v61  ;;  %v835_v2 = vsub.f32 %v823_v36, %v828_v62  ;;  %v834_v49 = vpop.xlane.xlu0 %833  ;;  %v1070_v62 = vsub.s32 3, %v2109_v25 }
 0x544   :  { %v837_v5 = vsub.f32 %v825_v37, %v834_v49 }
 0x545   :  { %v838_v6 = vmul.f32 1.442695, %v835_v2  ;;  %v1071_v2 = vrot.slane %v2115_v32, %v1070_v62 }
 0x546   :  { %1693 = vmatpush3.bf16.msra.mxu0 %v859_v61  ;;  %v842_v54 = vmul.f32 1.442695, %v837_v5  ;;  %v863_v60 = vpop.permute.xlu1 %862 }
 0x547   :  { %v831_v15 = vpop.xlane.xlu0 %830  ;;  %1859 = vpow2.f32 %v838_v6 }
 0x548   :  { %v836_v0 = vsub.f32 %v2272_v41, %v831_v15  ;;  %1861 = vpow2.f32 %v842_v54 }
 0x54a   :  { %v840_v16 = vmul.f32 1.442695, %v836_v0 }
 0x54b   :  { %v861_v17 = vpop.permute.xlu0 %860 }
 0x54c   :  { %1863 = vpow2.f32 %v840_v16  ;;  %1694 = vmatprep.subr.bf16.mxu0 %v861_v17 }
 0x54d   :  { %1695 = vmatpush3.bf16.msra.mxu0 %v861_v17 }
 0x54e   :  { %1696 = vmatprep.subr.bf16.mxu0 %v863_v60 }
 0x551   :  { %1697 = vmatpush3.bf16.msra.mxu0 %v863_v60  ;;  %v1860_v18 = vpop.eup %1859 }
 0x552   :  { %1702 = vmatprep.subr.bf16.mxu0 %v2081_v8  ;;  %v1862_v19 = vpop.eup %1861 }
 0x553   :  { %v845_v22 = vpack.c.bf16 %v1862_v19, %v1862_v19 }
 0x556   :  { %v1864_v20 = vpop.eup %1863 }
 0x557   :  { %v844_v63 = vpack.c.bf16 %v1864_v20, %v1860_v18 }
 0x559   :  { %1698 = vmatprep.mubr.msk.bf16.mxu0 %vm553_vm4, %v844_v63 }
 0x55a   :  { %1699 = vmatmul.mubr.msk.bf16.vlgmr.msra.gmra.mrb[20].mxu0 %vm553_vm4, %v845_v22 }
 0x55b   :  { %1703 = vmatpush3.bf16.msra.mxu0 %v2081_v8  ;;  %1714 = vmatprep.mubr.msk.bf16.mxu0 %vm553_vm4, %v844_v63  ;;  %v1830_v8 = vld [vmem:[%s2462_s1 + $0x38] sm:$0xff]  }
 0x55c   :  { %1704 = vmatprep.subr.bf16.mxu0 %v2076_v7 }
 0x55f   :  { %1705 = vmatpush3.bf16.msra.mxu0 %v2076_v7  ;;  %v1829_v7 = vld [vmem:[%s2462_s1 + $0x30] sm:$0xff]  }
 0x560   :  { %1706 = vmatprep.subr.bf16.mxu0 %v2087_v9  ;;  %1719 = vmatpush3.bf16.msra.mxu1 %v1829_v7 }
 0x561   :  { %1720 = vmatprep.subr.bf16.mxu1 %v1926_v1 }
 0x563   :  { %1707 = vmatpush3.bf16.msra.mxu0 %v2087_v9 }
 0x564   :  { %1708 = vmatprep.subr.bf16.mxu0 %v2099_v12  ;;  %1721 = vmatpush3.bf16.msra.mxu1 %v1830_v8 }
 0x565   :  { %1778 = vmatprep.subr.bf16.mxu1 %v1926_v1 }
 0x567   :  { %1709 = vmatpush3.bf16.msra.mxu0 %v2099_v12 }
 0x568   :  { %1710 = vmatprep.subr.bf16.mxu0 %v2093_v10 }
 0x56b   :  { %1711 = vmatpush3.bf16.msra.mxu0 %v2093_v10 }
 0x56c   :  { %1712 = vmatprep.subr.bf16.mxu0 %v2106_v13 }
 0x56f   :  { %1713 = vmatpush3.bf16.msra.mxu0 %v2106_v13 }
 0x570   :  { %1734 = vmatprep.subr.bf16.mxu0 %v1926_v1 }
 0x572   :  { %1715 = vmatmul.mubr.msk.bf16.vlgmr.msra.gmra.mrb[24].mxu0 %vm553_vm4, %v845_v22 }
 0x573   :  { %1738 = vmatprep.mubr.msk.bf16.mxu0 %vm1927_vm0, %v1926_v1 }
 0x5f4   :  { %v1652_v9 = vpop.f32.mrb[12].mxu0 }
 0x5f5   :  { %v638_v10 = vpop.f32.mrb[13].mxu0 }
 0x5f6   :  { %v1653_v12 = vpop.f32.mrb[14].mxu0 }
 0x5f7   :  { %v641_v13 = vpop.f32.mrb[15].mxu0 }
 0x60c   :  { %v1668_v23 = vpop.f32.mrb[16].mxu0 }
 0x60d   :  { %v708_v26 = vmax.f32 %v1668_v23, 1e-30  ;;  %v692_v27 = vpop.f32.mrb[17].mxu0 }
 0x60e   :  { %v706_v28 = vmax.f32 %v692_v27, 1e-30  ;;  %v1669_v30 = vpop.f32.mrb[18].mxu0 }
 0x60f   :  { %1865 = vrcp.f32 %v708_v26  ;;  %v695_v33 = vpop.f32.mrb[19].mxu0 }
 0x610   :  { %1867 = vrcp.f32 %v706_v28  ;;  %v707_v35 = vmax.f32 %v695_v33, 1e-30 }
 0x612   :  { %1869 = vrcp.f32 %v707_v35 }
 0x619   :  { %v1866_v36 = vpop.eup %1865 }
 0x61a   :  { %v1868_v37 = vpop.eup %1867  ;;  %v714_v39 = vmul.f32 %v1866_v36, %v1652_v9 }
 0x61b   :  { %v712_v41 = vmul.f32 %v1868_v37, %v638_v10 }
 0x61c   :  { %v1870_v43 = vpop.eup %1869 }
 0x61d   :  { %v713_v46 = vmul.f32 %v1870_v43, %v641_v13 }
 0x61f   :  { %v981_v3 = vpack.c.bf16 %v713_v46, %v712_v41 }
 0x621   :  { %1723 = vmatmul.mubr.msk.bf16.vlgmr.msra.gmra.mrb[20].mxu1 %vm183_vm2, %v981_v3 }
 0x622   :  { %1726 = vmatprep.mubr.msk.bf16.mxu1 %vm1927_vm0, %v1926_v1 }
 0x62d   :  { %v1700_v38 = vpop.f32.mrb[20].mxu0 }
 0x62e   :  { %v910_v47 = vpop.f32.mrb[21].mxu0 }
 0x62f   :  { %v1701_v48 = vpop.f32.mrb[22].mxu0 }
 0x630   :  { %v913_v50 = vpop.f32.mrb[23].mxu0 }
 0x645   :  { %v1716_v51 = vpop.f32.mrb[24].mxu0 }
 0x646   :  { %v974_v55 = vmax.f32 %v1716_v51, 1e-30  ;;  %v958_v56 = vpop.f32.mrb[25].mxu0 }
 0x647   :  { %v972_v57 = vmax.f32 %v958_v56, 1e-30  ;;  %v1717_v29 = vpop.f32.mrb[26].mxu0 }
 0x648   :  { %1871 = vrcp.f32 %v974_v55  ;;  %v961_v58 = vpop.f32.mrb[27].mxu0 }
 0x649   :  { %1873 = vrcp.f32 %v972_v57  ;;  %v973_v59 = vmax.f32 %v961_v58, 1e-30 }
 0x64b   :  { %1875 = vrcp.f32 %v973_v59 }
 0x652   :  { %v1872_v45 = vpop.eup %1871 }
 0x653   :  { %v1874_v44 = vpop.eup %1873  ;;  %v980_v53 = vmul.f32 %v1872_v45, %v1700_v38  ;;  %v1831_v38 = vld [vmem:[%s2462_s1 + $0x40] sm:$0xff]  }
 0x654   :  { %v978_v52 = vmul.f32 %v1874_v44, %v910_v47  ;;  %1735 = vmatpush3.bf16.msra.mxu0 %v1831_v38  ;;  %v1832_v47 = vld [vmem:[%s2462_s1 + $0x48] sm:$0xff]  }
 0x655   :  { %v1876_v4 = vpop.eup %1875  ;;  %1736 = vmatprep.subr.bf16.mxu0 %v1926_v1 }
 0x656   :  { %v982_v40 = vpack.c.bf16 %v978_v52, %v714_v39  ;;  %v979_v42 = vmul.f32 %v1876_v4, %v913_v50 }
 0x658   :  { %1727 = vmatmul.mubr.msk.bf16.gmra.mrb[24].mxu1 %vm183_vm2, %v982_v40  ;;  %v983_v61 = vpack.c.bf16 %v980_v53, %v979_v42  ;;  %1737 = vmatpush3.bf16.msra.mxu0 %v1832_v47 }
 0x659   :  { %1730 = vmatprep.mubr.msk.bf16.mxu1 %vm1927_vm0, %v1926_v1  ;;  %1750 = vmatprep.subr.bf16.mxu0 %v1926_v1 }
 0x660   :  { %1731 = vmatmul.mubr.msk.bf16.gmra.mrb[28].mxu1 %vm183_vm2, %v983_v61 }
 0x661   :  { %1770 = vmatprep.mubr.msk.bf16.mxu1 %vm1927_vm0, %v1926_v1 }
 0x6f4   :  { %v1039_v49 = vpop.f32.mrb[20].mxu1 }
 0x6f5   :  { %v1062_v5 = vadd.f32 %v1039_v49, %v1994_v11  ;;  %v1724_v6 = vpop.f32.mrb[21].mxu1 }
 0x6f6   :  { %v1042_v54 = vpop.f32.mrb[22].mxu1 }
 0x6f7   :  { %v2338_v15 = vadd.f32 %v1071_v2, %v1062_v5  ;;  %v1063_v0 = vadd.f32 %v1042_v54, %v1996_v14  ;;  %v1725_v16 = vpop.f32.mrb[23].mxu1 }
 0x6f9   :  { %v2341_v17 = vadd.f32 %v1071_v2, %v1063_v0  ;;  %v1078_v60 = vsel %vm183_vm2, %v2338_v15, 0.0 }
 0x6fa   :  { %1079 = vadd.xlane.f32.xlu0 %v1078_v60 }
 0x6fb   :  { %v1081_v18 = vsel %vm183_vm2, %v2341_v17, 0.0 }
 0x6fc   :  { %1082 = vadd.xlane.f32.xlu1 %v1081_v18  ;;  %v1158_v18 = vsub.s32 4, %v2109_v25 }
 0x72b   :  { %v1047_v19 = vpop.f32.mrb[24].mxu1 }
 0x72c   :  { %v1064_v11 = vadd.f32 %v1047_v19, %v2008_v21  ;;  %v1728_v20 = vpop.f32.mrb[25].mxu1  ;;  %v1159_v19 = vrot.slane %v2115_v32, %v1158_v18 }
 0x72d   :  { %v1050_v63 = vpop.f32.mrb[26].mxu1 }
 0x72e   :  { %v1065_v22 = vadd.f32 %v1050_v63, %v2010_v24  ;;  %v1729_v7 = vpop.f32.mrb[27].mxu1  ;;  %v1074_v14 = vadd.f32 %v1071_v2, %v1064_v11  ;;  %v1168_v11 = vsub.s32 5, %v2109_v25 }
 0x730   :  { %v2349_v8 = vadd.f32 %v1071_v2, %v1065_v22  ;;  %v1084_v9 = vsel %vm183_vm2, %v1074_v14, 0.0 }
 0x731   :  { %1085 = vadd.xlane.f32.xlu0 %v1084_v9  ;;  %v1169_v9 = vrot.slane %v2115_v32, %v1168_v11 }
 0x732   :  { %v1087_v23 = vsel %vm183_vm2, %v2349_v8, 0.0 }
 0x733   :  { %v1055_v10 = vpop.f32.mrb[28].mxu1 }
 0x734   :  { %v1066_v12 = vadd.f32 %v1055_v10, %v2022_v31  ;;  %v1732_v13 = vpop.f32.mrb[29].mxu1 }
 0x735   :  { %1088 = vadd.xlane.f32.xlu0 %v1087_v23  ;;  %v1058_v21 = vpop.f32.mrb[30].mxu1 }
 0x736   :  { %v2355_v26 = vadd.f32 %v1071_v2, %v1066_v12  ;;  %v1067_v24 = vadd.f32 %v1058_v21, %v2024_v34  ;;  %v1733_v27 = vpop.f32.mrb[31].mxu1 }
 0x738   :  { %v1090_v28 = vsel %vm183_vm2, %v2355_v26, 0.0  ;;  %v1077_v30 = vadd.f32 %v1071_v2, %v1067_v24 }
 0x739   :  { %1091 = vadd.xlane.f32.xlu0 %v1090_v28 }
 0x73a   :  { %v1093_v33 = vsel %vm183_vm2, %v1077_v30, 0.0 }
 0x73b   :  { %1094 = vadd.xlane.f32.xlu1 %v1093_v33 }
 0x787   :  { %v1080_v31 = vpop.xlane.xlu0 %1079 }
 0x788   :  { %v1096_v35 = vmul.f32 0.03125, %v1080_v31 }
 0x789   :  { %v1083_v36 = vpop.xlane.xlu1 %1082 }
 0x78a   :  { %v1102_v37 = vsub.f32 %v2338_v15, %v1096_v35  ;;  %v1097_v39 = vmul.f32 0.03125, %v1083_v36 }
 0x78c   :  { %v1103_v41 = vsub.f32 %v2341_v17, %v1097_v39  ;;  %v1108_v43 = vmul.f32 %v1102_v37, %v1102_v37 }
 0x78e   :  { %v1114_v34 = vsel %vm183_vm2, %v1108_v43, 0.0  ;;  %v1109_v46 = vmul.f32 %v1103_v41, %v1103_v41 }
 0x78f   :  { %1115 = vadd.xlane.f32.xlu0 %v1114_v34 }
 0x790   :  { %v1117_v3 = vsel %vm183_vm2, %v1109_v46, 0.0 }
 0x791   :  { %1118 = vadd.xlane.f32.xlu1 %v1117_v3 }
 0x7be   :  { %v1086_v48 = vpop.xlane.xlu0 %1085 }
 0x7bf   :  { %v1098_v50 = vmul.f32 0.03125, %v1086_v48 }
 0x7c1   :  { %v1104_v51 = vsub.f32 %v1074_v14, %v1098_v50 }
 0x7c2   :  { %v1089_v55 = vpop.xlane.xlu0 %1088 }
 0x7c3   :  { %v1099_v56 = vmul.f32 0.03125, %v1089_v55  ;;  %v1110_v57 = vmul.f32 %v1104_v51, %v1104_v51 }
 0x7c5   :  { %v1105_v29 = vsub.f32 %v2349_v8, %v1099_v56  ;;  %v1120_v58 = vsel %vm183_vm2, %v1110_v57, 0.0 }
 0x7c6   :  { %1121 = vadd.xlane.f32.xlu0 %v1120_v58  ;;  %v1092_v59 = vpop.xlane.xlu0 %1091 }
 0x7c7   :  { %v1100_v45 = vmul.f32 0.03125, %v1092_v59  ;;  %v1111_v44 = vmul.f32 %v1105_v29, %v1105_v29 }
 0x7c8   :  { %v1095_v53 = vpop.xlane.xlu1 %1094 }
 0x7c9   :  { %v1106_v52 = vsub.f32 %v2355_v26, %v1100_v45  ;;  %v1101_v4 = vmul.f32 0.03125, %v1095_v53  ;;  %v1123_v40 = vsel %vm183_vm2, %v1111_v44, 0.0 }
 0x7ca   :  { %1124 = vadd.xlane.f32.xlu1 %v1123_v40  ;;  %v1836_v40 = vld [vmem:[%s2462_s1 + $0x68] sm:$0xff]  }
 0x7cb   :  { %v1107_v42 = vsub.f32 %v1077_v30, %v1101_v4  ;;  %v1112_v61 = vmul.f32 %v1106_v52, %v1106_v52  ;;  %v1835_v4 = vld [vmem:[%s2462_s1 + $0x60] sm:$0xff]  }
 0x7cd   :  { %v1126_v62 = vsel %vm183_vm2, %v1112_v61, 0.0  ;;  %v1113_v2 = vmul.f32 %v1107_v42, %v1107_v42  ;;  %v1838_v61 = vld [vmem:[%s2462_s1 + $0x78] sm:$0xff]  }
 0x7ce   :  { %1127 = vadd.xlane.f32.xlu0 %v1126_v62  ;;  %v1839_v62 = vld [vmem:[%s2462_s1 + $0x80] sm:$0xff]  }
 0x7cf   :  { %v1129_v49 = vsel %vm183_vm2, %v1113_v2, 0.0  ;;  %v1840_v2 = vld [vmem:[%s2462_s1 + $0x88] sm:$0xff]  }
 0x7d0   :  { %1130 = vadd.xlane.f32.xlu1 %v1129_v49  ;;  %v1181_v49 = vsub.s32 6, %v2109_v25 }
 0x81c   :  { %v1116_v5 = vpop.xlane.xlu0 %1115 }
 0x81d   :  { %v1132_v6 = vmul.f32 0.03125, %v1116_v5  ;;  %v2434_v5 = vld [vmem:[%s2463_s2 + $0x30] sm:$0xff] }
 0x81e   :  { %v1119_v54 = vpop.xlane.xlu1 %1118 }
 0x81f   :  { %v1138_v0 = vadd.f32 1e-06, %v1132_v6  ;;  %v1133_v16 = vmul.f32 0.03125, %v1119_v54  ;;  %v1182_v6 = vrot.slane %v2434_v5, %v1181_v49 }
 0x821   :  { %1877 = vrsqrt.f32 %v1138_v0  ;;  %v1139_v60 = vadd.f32 1e-06, %v1133_v16 }
 0x823   :  { %1879 = vrsqrt.f32 %v1139_v60 }
 0x82b   :  { %v1878_v20 = vpop.eup %1877 }
 0x82c   :  { %v1150_v63 = vmul.f32 %v1878_v20, %v1102_v37 }
 0x82d   :  { %v1880_v22 = vpop.eup %1879 }
 0x82e   :  { %v1160_v7 = vmul.f32 %v1159_v19, %v1150_v63  ;;  %v1151_v14 = vmul.f32 %v1880_v22, %v1103_v41 }
 0x830   :  { %v1161_v10 = vmul.f32 %v1159_v19, %v1151_v14  ;;  %v1170_v12 = vadd.f32 %v1169_v9, %v1160_v7 }
 0x832   :  { %v1171_v13 = vadd.f32 %v1169_v9, %v1161_v10 }
 0x834   :  { %v1176_v23 = vpack.c.bf16 %v1171_v13, %v1170_v12 }
 0x836   :  { %1739 = vmatmul.mubr.msk.bf16.vlgmr.msra.gmra.mrb[28].mxu0 %vm183_vm2, %v1176_v23 }
 0x837   :  { %1742 = vmatprep.mubr.msk.bf16.mxu0 %vm1927_vm0, %v1926_v1 }
 0x853   :  { %v1122_v21 = vpop.xlane.xlu0 %1121 }
 0x854   :  { %v1134_v24 = vmul.f32 0.03125, %v1122_v21 }
 0x856   :  { %v1140_v27 = vadd.f32 1e-06, %v1134_v24 }
 0x857   :  { %v1125_v28 = vpop.xlane.xlu1 %1124 }
 0x858   :  { %1881 = vrsqrt.f32 %v1140_v27  ;;  %v1135_v30 = vmul.f32 0.03125, %v1125_v28 }
 0x85a   :  { %v1141_v33 = vadd.f32 1e-06, %v1135_v30 }
 0x85b   :  { %v1128_v31 = vpop.xlane.xlu0 %1127 }
 0x85c   :  { %1883 = vrsqrt.f32 %v1141_v33  ;;  %v1136_v35 = vmul.f32 0.03125, %v1128_v31 }
 0x85d   :  { %v1131_v32 = vpop.xlane.xlu1 %1130 }
 0x85e   :  { %v1142_v36 = vadd.f32 1e-06, %v1136_v35  ;;  %v1137_v37 = vmul.f32 0.03125, %v1131_v32 }
 0x860   :  { %1885 = vrsqrt.f32 %v1142_v36  ;;  %v1143_v39 = vadd.f32 1e-06, %v1137_v37 }
 0x862   :  { %v1882_v41 = vpop.eup %1881  ;;  %1887 = vrsqrt.f32 %v1143_v39 }
 0x863   :  { %v1152_v43 = vmul.f32 %v1882_v41, %v1104_v51 }
 0x865   :  { %v1162_v3 = vmul.f32 %v1159_v19, %v1152_v43 }
 0x866   :  { %v1884_v34 = vpop.eup %1883 }
 0x867   :  { %v1153_v46 = vmul.f32 %v1884_v34, %v1105_v29  ;;  %v1172_v50 = vadd.f32 %v1169_v9, %v1162_v3  ;;  %v1833_v29 = vld [vmem:[%s2462_s1 + $0x50] sm:$0xff]  }
 0x868   :  { %1751 = vmatpush3.bf16.msra.mxu0 %v1833_v29  ;;  %1786 = vmatpush3.bf16.msra.mxu1 %v1833_v29 }
 0x869   :  { %v1163_v38 = vmul.f32 %v1159_v19, %v1153_v46  ;;  %1752 = vmatprep.subr.bf16.mxu0 %v1926_v1  ;;  %1779 = vmatprep.subr.bf16.mxu1 %v1926_v1 }
 0x86a   :  { %v1886_v47 = vpop.eup %1885 }
 0x86b   :  { %v1154_v48 = vmul.f32 %v1886_v47, %v1106_v52  ;;  %v1173_v55 = vadd.f32 %v1169_v9, %v1163_v38  ;;  %v1834_v52 = vld [vmem:[%s2462_s1 + $0x58] sm:$0xff]  }
 0x86c   :  { %v1888_v56 = vpop.eup %1887  ;;  %1753 = vmatpush3.bf16.msra.mxu0 %v1834_v52  ;;  %1787 = vmatpush3.bf16.msra.mxu1 %v1834_v52 }
 0x86d   :  { %v1155_v57 = vmul.f32 %v1888_v56, %v1107_v42  ;;  %v1177_v58 = vpack.c.bf16 %v1173_v55, %v1172_v50  ;;  %v1164_v59 = vmul.f32 %v1159_v19, %v1154_v48  ;;  %1754 = vmatprep.subr.bf16.mxu0 %v1926_v1  ;;  %1780 = vmatprep.subr.bf16.mxu1 %v1926_v1  ;;  %v1837_v42 = vld [vmem:[%s2462_s1 + $0x70] sm:$0xff]   ;;  %s1931_s1 = smov [#allocation2]  }
 0x86e   :  { %s1443_s2 = sshll.u32 %s1931_s1, 4  ;;  %s1444_s2 = int_to_ptr.vmem [resolvable:$true] %s1443_s2 }
 0x86f   :  { %1743 = vmatmul.mubr.msk.bf16.gmra.mrb[32].mxu0 %vm183_vm2, %v1177_v58  ;;  %v1165_v45 = vmul.f32 %v1159_v19, %v1155_v57  ;;  %v1174_v51 = vadd.f32 %v1169_v9, %v1164_v59  ;;  %s1902_s29 = scalar_lea.vmem %s1444_s2, 512  ;;  %p1907_p1 = scmp.lt.s32.totalorder %s1444_s2, %s1444_s2 }
 0x870   :  { %1746 = vmatprep.mubr.msk.bf16.mxu0 %vm1927_vm0, %v1926_v1  ;;  %1755 = vmatpush3.bf16.msra.mxu0 %v1835_v4  ;;  %p1903_p0 = scmp.ne.s32.totalorder %s1444_s2, %s1902_s29  ;;  %p1908_p2 = scmp.lt.s32.totalorder %s1902_s29, %s1902_s29 }
 0x871   :  { %v1175_v44 = vadd.f32 %v1169_v9, %v1165_v45  ;;  %1788 = vmatpush3.bf16.msra.mxu1 %v1835_v4  ;;  %1756 = vmatprep.subr.bf16.mxu0 %v1926_v1 }
 0x872   :  { %1781 = vmatprep.subr.bf16.mxu1 %v1926_v1  ;;  %p1909_p3 = por %p1908_p2, %p1907_p1 }
 0x873   :  { %v1178_v53 = vpack.c.bf16 %v1175_v44, %v1174_v51 }
 0x874   :  { %1757 = vmatpush3.bf16.msra.mxu0 %v1836_v40  ;;  %p1910_p4 = pnand %p1909_p3, %p1903_p0 }
 0x875   :  { %1789 = vmatpush3.bf16.msra.mxu1 %v1836_v40  ;;  %1758 = vmatprep.subr.bf16.mxu0 %v1926_v1 }
 0x876   :  { %1782 = vmatprep.subr.bf16.mxu1 %v1926_v1 }
 0x877   :  { %1747 = vmatmul.mubr.msk.bf16.gmra.mrb[36].mxu0 %vm183_vm2, %v1178_v53 }
 0x878   :  { %1766 = vmatprep.mubr.msk.bf16.mxu0 %vm1927_vm0, %v1926_v1  ;;  %1759 = vmatpush3.bf16.msra.mxu0 %v1837_v42 }
 0x879   :  { %1790 = vmatpush3.bf16.msra.mxu1 %v1837_v42  ;;  %1760 = vmatprep.subr.bf16.mxu0 %v1926_v1 }
 0x87a   :  { %1783 = vmatprep.subr.bf16.mxu1 %v1926_v1 }
 0x87c   :  { %1761 = vmatpush3.bf16.msra.mxu0 %v1838_v61 }
 0x87d   :  { %1791 = vmatpush3.bf16.msra.mxu1 %v1838_v61  ;;  %1762 = vmatprep.subr.bf16.mxu0 %v1926_v1 }
 0x87e   :  { %1784 = vmatprep.subr.bf16.mxu1 %v1926_v1 }
 0x880   :  { %1763 = vmatpush3.bf16.msra.mxu0 %v1839_v62 }
 0x881   :  { %1792 = vmatpush3.bf16.msra.mxu1 %v1839_v62  ;;  %1764 = vmatprep.subr.bf16.mxu0 %v1926_v1 }
 0x882   :  { %1785 = vmatprep.subr.bf16.mxu1 %v1926_v1 }
 0x884   :  { %1765 = vmatpush3.bf16.msra.mxu0 %v1840_v2 }
 0x885   :  { %1793 = vmatpush3.bf16.msra.mxu1 %v1840_v2 }
 0x909   :  { %v1238_v54 = vpop.f32.mrb[28].mxu0 }
 0x90a   :  { %v1239_v0 = vadd.f32 %v1238_v54, %v1182_v6  ;;  %v1740_v16 = vpop.f32.mrb[29].mxu0 }
 0x90b   :  { %v1241_v60 = vpop.f32.mrb[30].mxu0 }
 0x90c   :  { %v1261_v18 = vmul.f32 %v1239_v0, %v1239_v0  ;;  %v1242_v19 = vadd.f32 %v1241_v60, %v1182_v6  ;;  %v1741_v11 = vpop.f32.mrb[31].mxu0 }
 0x90e   :  { %v1267_v20 = vmul.f32 %v1261_v18, %v1239_v0  ;;  %v1262_v63 = vmul.f32 %v1242_v19, %v1242_v19 }
 0x910   :  { %v1273_v22 = vmul.f32 0.044715, %v1267_v20  ;;  %v1268_v7 = vmul.f32 %v1262_v63, %v1242_v19 }
 0x912   :  { %v1279_v14 = vadd.f32 %v1273_v22, %v1239_v0  ;;  %v1274_v9 = vmul.f32 0.044715, %v1268_v7 }
 0x914   :  { %v1285_v10 = vmul.f32 0.7978846, %v1279_v14  ;;  %v1280_v12 = vadd.f32 %v1274_v9, %v1242_v19 }
 0x916   :  { %1889 = vtanh.f32 %v1285_v10  ;;  %v1286_v13 = vmul.f32 0.7978846, %v1280_v12 }
 0x918   :  { %1891 = vtanh.f32 %v1286_v13 }
 0x920   :  { %v1890_v23 = vpop.eup %1889 }
 0x921   :  { %v1297_v21 = vadd.f32 1.0, %v1890_v23 }
 0x922   :  { %v1892_v24 = vpop.eup %1891 }
 0x923   :  { %v1303_v27 = vmul.f32 0.5, %v1297_v21  ;;  %v1298_v28 = vadd.f32 1.0, %v1892_v24  ;;  %v1427_v24 = vsub.s32 7, %v2109_v25 }
 0x925   :  { %v1304_v30 = vmul.f32 0.5, %v1298_v28  ;;  %v1309_v33 = vmul.f32 %v1303_v27, %v1239_v0  ;;  %v1428_v27 = vrot.slane %v2434_v5, %v1427_v24 }
 0x927   :  { %v1310_v31 = vmul.f32 %v1304_v30, %v1242_v19 }
 0x929   :  { %v1315_v35 = vpack.c.bf16 %v1310_v31, %v1309_v33 }
 0x92b   :  { %1767 = vmatmul.mubr.bf16.vlgmr.msra.gmra.mrb[40].mxu0 %v1315_v35 }
 0x942   :  { %v1246_v32 = vpop.f32.mrb[32].mxu0 }
 0x943   :  { %v1247_v36 = vadd.f32 %v1246_v32, %v1182_v6  ;;  %v1744_v37 = vpop.f32.mrb[33].mxu0 }
 0x944   :  { %v1249_v39 = vpop.f32.mrb[34].mxu0 }
 0x945   :  { %v1263_v41 = vmul.f32 %v1247_v36, %v1247_v36  ;;  %v1250_v43 = vadd.f32 %v1249_v39, %v1182_v6  ;;  %v1745_v34 = vpop.f32.mrb[35].mxu0 }
 0x947   :  { %v1269_v46 = vmul.f32 %v1263_v41, %v1247_v36  ;;  %v1264_v3 = vmul.f32 %v1250_v43, %v1250_v43 }
 0x949   :  { %v1275_v38 = vmul.f32 0.044715, %v1269_v46  ;;  %v1270_v47 = vmul.f32 %v1264_v3, %v1250_v43 }
 0x94a   :  { %v1254_v48 = vpop.f32.mrb[36].mxu0 }
 0x94b   :  { %v1281_v50 = vadd.f32 %v1275_v38, %v1247_v36  ;;  %v1276_v55 = vmul.f32 0.044715, %v1270_v47  ;;  %v1255_v56 = vadd.f32 %v1254_v48, %v1182_v6  ;;  %v1748_v57 = vpop.f32.mrb[37].mxu0 }
 0x94c   :  { %v1257_v58 = vpop.f32.mrb[38].mxu0 }
 0x94d   :  { %v1287_v59 = vmul.f32 0.7978846, %v1281_v50  ;;  %v1282_v45 = vadd.f32 %v1276_v55, %v1250_v43  ;;  %v1265_v44 = vmul.f32 %v1255_v56, %v1255_v56  ;;  %v1258_v51 = vadd.f32 %v1257_v58, %v1182_v6  ;;  %v1749_v53 = vpop.f32.mrb[39].mxu0 }
 0x94f   :  { %1893 = vtanh.f32 %v1287_v59  ;;  %v1288_v29 = vmul.f32 0.7978846, %v1282_v45  ;;  %v1271_v52 = vmul.f32 %v1265_v44, %v1255_v56  ;;  %v1266_v4 = vmul.f32 %v1258_v51, %v1258_v51 }
 0x951   :  { %1895 = vtanh.f32 %v1288_v29  ;;  %v1277_v40 = vmul.f32 0.044715, %v1271_v52  ;;  %v1272_v42 = vmul.f32 %v1266_v4, %v1258_v51 }
 0x953   :  { %v1283_v61 = vadd.f32 %v1277_v40, %v1255_v56  ;;  %v1278_v62 = vmul.f32 0.044715, %v1272_v42 }
 0x955   :  { %v1289_v2 = vmul.f32 0.7978846, %v1283_v61  ;;  %v1284_v49 = vadd.f32 %v1278_v62, %v1258_v51 }
 0x957   :  { %1897 = vtanh.f32 %v1289_v2  ;;  %v1290_v54 = vmul.f32 0.7978846, %v1284_v49 }
 0x959   :  { %v1894_v0 = vpop.eup %1893  ;;  %1899 = vtanh.f32 %v1290_v54 }
 0x95a   :  { %v1299_v16 = vadd.f32 1.0, %v1894_v0 }
 0x95b   :  { %v1896_v60 = vpop.eup %1895 }
 0x95c   :  { %v1305_v18 = vmul.f32 0.5, %v1299_v16  ;;  %v1300_v6 = vadd.f32 1.0, %v1896_v60 }
 0x95e   :  { %v1306_v19 = vmul.f32 0.5, %v1300_v6  ;;  %v1311_v11 = vmul.f32 %v1305_v18, %v1247_v36 }
 0x960   :  { %v1312_v20 = vmul.f32 %v1306_v19, %v1250_v43 }
 0x961   :  { %v1898_v63 = vpop.eup %1897 }
 0x962   :  { %v1316_v22 = vpack.c.bf16 %v1312_v20, %v1311_v11  ;;  %v1301_v7 = vadd.f32 1.0, %v1898_v63 }
 0x963   :  { %v1900_v14 = vpop.eup %1899 }
 0x964   :  { %1771 = vmatmul.mubr.bf16.vlgmr.msra.gmra.mrb[32].mxu1 %v1316_v22  ;;  %v1302_v9 = vadd.f32 1.0, %v1900_v14  ;;  %v1307_v10 = vmul.f32 0.5, %v1301_v7 }
 0x965   :  { %1774 = vmatprep.mubr.msk.bf16.mxu1 %vm1927_vm0, %v1926_v1 }
 0x966   :  { %v1308_v12 = vmul.f32 0.5, %v1302_v9  ;;  %v1313_v13 = vmul.f32 %v1307_v10, %v1255_v56 }
 0x968   :  { %v1314_v23 = vmul.f32 %v1308_v12, %v1258_v51 }
 0x96a   :  { %v1317_v21 = vpack.c.bf16 %v1314_v23, %v1313_v13 }
 0x96c   :  { %1775 = vmatmul.mubr.bf16.gmra.mrb[36].mxu1 %v1317_v21 }
 0x9fe   :  { %v1400_v28 = vpop.f32.mrb[40].mxu0 }
 0x9ff   :  { %v1421_v30 = vadd.f32 %v1400_v28, %v2338_v15  ;;  %v1768_v33 = vpop.f32.mrb[41].mxu0 }
 0xa00   :  { %v1403_v31 = vpop.f32.mrb[42].mxu0 }
 0xa01   :  { %v1429_v35 = vadd.f32 %v1428_v27, %v1421_v30  ;;  %v1422_v32 = vadd.f32 %v1403_v31, %v2341_v17  ;;  %v1769_v36 = vpop.f32.mrb[43].mxu0 }
 0xa03   :  { %1433 = vst.msk [vmem:[#allocation2] sm:$0xff] %vm183_vm2, %v1429_v35  ;;  %v1430_v1 = vadd.f32 %v1428_v27, %v1422_v32 }
 0xa05   :  { %1434 = vst.msk [vmem:[#allocation2 + $0x8] sm:$0xff] %vm183_vm2, %v1430_v1 }
 0xa37   :  { %v1408_v37 = vpop.f32.mrb[32].mxu1 }
 0xa38   :  { %v1772_v39 = vpop.f32.mrb[33].mxu1 }
 0xa39   :  { %v1410_v41 = vpop.f32.mrb[34].mxu1 }
 0xa3a   :  { %v1423_v25 = vadd.f32 %v1410_v41, %v2349_v8  ;;  %v1773_v5 = vpop.f32.mrb[35].mxu1 }
 0xa3c   :  { %v1431_v43 = vadd.f32 %v1428_v27, %v1423_v25 }
 0xa3e   :  { %1436 = vst.msk [vmem:[#allocation2 + $0x10] sm:$0xff] %vm183_vm2, %v1431_v43 }
 0xa3f   :  { %v1415_v15 = vpop.f32.mrb[36].mxu1 }
 0xa40   :  { %v1424_v17 = vadd.f32 %v1415_v15, %v2355_v26  ;;  %v1776_v34 = vpop.f32.mrb[37].mxu1 }
 0xa41   :  { %v1418_v46 = vpop.f32.mrb[38].mxu1 }
 0xa42   :  { %v1432_v3 = vadd.f32 %v1428_v27, %v1424_v17  ;;  %v1777_v38 = vpop.f32.mrb[39].mxu1 }
 0xa44   :  { %1437 = vst.msk [vmem:[#allocation2 + $0x18] sm:$0xff] %vm183_vm2, %v1432_v3 }
 0xa45   :  { %1913 = shalt.err (!%p1910_p4)
}
 0xa46   :  { %s1914_s4 = scalar_lea.hbm %s2464_s3, 512 }
 0xa47   :  { %p1915_p5 = scmp.ne.s32.totalorder %s2464_s3, %s1914_s4  ;;  %p1918_p6 = scmp.lt.u32.totalorder %s1914_s4, %s2464_s3 }
 0xa49   :  { %p1920_p7 = pnand %p1918_p6, %p1915_p5 }
 0xa4b   :  { %1923 = shalt.err (!%p1920_p7)
}
 0xa4c   :  { %s1932_s9 = smov 128   ;;  %s1933_s10 = smov 8  }
 0xa4d   :  { %1449 = dma.vmem_to_hbm [thread:$0]  %s1444_s2, 512, %s2464_s3, [#allocation3], %s1932_s9, %s1932_s9, %s1933_s10  }
 0xa4e   :  { %1924 = dma.done.wait [#allocation3], 512  }
 0xa4f   :  { %1925 = vsyncadd [#allocation3], 4294966784 }
 0xa50   :  { %1453 = vsyncpa [#allocation3], 1 }

</bundles_post_ra>
